<compile_context>
chip_gen: v7x
topology: tpu7x:2x2x1
jax: 0.10.0
libtpu: 0.0.40
codegen_flags: <defaults>
</compile_context>

<pallas_src>
import functools

import jax
import jax.numpy as jnp
from jax.experimental import pallas as pl
from jax.experimental.pallas import tpu as pltpu

NEG_SLOPE = 0.2   # PyG GATConv default negative_slope
BN_EPS = 1e-5     # nn.BatchNorm1d default eps


# ----------------------------- Pallas kernel ------------------------------- #

def _gnn_fused_kernel(*refs, num_layers, num_heads, head_dim):
    """Fused forward: num_layers x (GATConv + folded-eval-BN + ELU) + final Linear."""
    H, D = num_heads, head_dim
    HD = H * D
    n_in = 2 + 3 * num_layers + 2
    x_ref, adj_ref = refs[0], refs[1]
    layer_refs = refs[2:2 + 3 * num_layers]
    fcw_ref, fcb_ref = refs[n_in - 2], refs[n_in - 1]
    out_ref = refs[n_in]

    # Additive softmax mask computed once: 0 on edges / self-loops, -1e30 elsewhere.
    adj_bias = jnp.where(adj_ref[...].astype(jnp.float32) > 0.0,
                         jnp.float32(0.0), jnp.float32(-1e30))          # [N, N] f32

    h = x_ref[...]                                                      # [N, Fin] f32
    n = h.shape[0]

    for l in range(num_layers):
        w_ref, scale_ref, shift_ref = layer_refs[3 * l:3 * l + 3]

        # ONE MXU matmul yields per-head features AND attention logits:
        #   z[:, :H*D]        = x @ W            (per-head linear, concat over heads)
        #   z[:, H*D:H*D+2H]  = x @ (W @ A)      (per-head <x', a_src>, <x', a_dst>)
        z = jnp.dot(h.astype(jnp.bfloat16), w_ref[...],
                    preferred_element_type=jnp.float32)                 # [N, HD+2H] f32
        xp = z[:, :HD]                                                  # [N, H*D]
        alphas = z[:, HD:HD + 2 * H]                                    # [N, 2H]

        # e[h, i, j] = alpha_dst[i, h] + alpha_src[j, h]   (edge j -> i)
        a_t = jnp.transpose(alphas)                                     # [2H, N]
        a_src_t = a_t[:H]                                               # [H, N]
        a_dst_t = a_t[H:]                                               # [H, N]
        e = a_dst_t[:, :, None] + a_src_t[:, None, :]                   # [H, N, N]
        e = jnp.maximum(e, NEG_SLOPE * e)                               # LeakyReLU(0.2)
        e = e + adj_bias[None, :, :]                                    # mask non-edges
        e = e - jnp.max(e, axis=-1, keepdims=True)
        p = jnp.exp(e)                                                  # unnormalized
        denom = jnp.sum(p, axis=-1, keepdims=True)                      # [H, N, 1]
        # TODO(synk): attention dropout is a no-op in eval mode, so it is omitted.

        # Batched per-head aggregation on the MXU with UNNORMALIZED p; normalize the
        # much smaller [H, N, D] result afterwards (flash-attention style).
        xh = jnp.transpose(xp.astype(jnp.bfloat16).reshape(n, H, D), (1, 0, 2))
        agg = jnp.einsum('hij,hjd->hid', p.astype(jnp.bfloat16), xh,
                         preferred_element_type=jnp.float32)            # [H, N, D] f32
        agg = agg * pl.reciprocal(denom, approx=False)                  # exact softmax
        h_cat = jnp.transpose(agg, (1, 0, 2)).reshape(n, HD)            # [N, H*D]

        # Folded eval-BatchNorm (+ GAT bias), then ELU(alpha=1).
        hbn = h_cat * scale_ref[...] + shift_ref[...]
        h = jnp.where(hbn > 0, hbn, jnp.exp(jnp.minimum(hbn, 0.0)) - 1.0)

    # Final classifier, written to a lane-dense (128-wide padded) output slab.
    out_ref[...] = (jnp.dot(h.astype(jnp.bfloat16), fcw_ref[...],
                            preferred_element_type=jnp.float32) + fcb_ref[...])


# ------------------------------ JAX wrappers ------------------------------- #

def _full_spec(shape):
    nd = len(shape)
    return pl.BlockSpec(shape, lambda i, _nd=nd: (0,) * _nd)


def _pack_attention(att_src, att_dst):
    """Block-diagonal [H*D, 2H] so xp @ A yields all per-head alphas in one matmul."""
    H, D = att_src.shape
    a = jnp.zeros((H * D, 2 * H), jnp.float32)
    for h in range(H):
        a = a.at[h * D:(h + 1) * D, h].set(att_src[h])
        a = a.at[h * D:(h + 1) * D, H + h].set(att_dst[h])
    return a


def _fold_layer_params(layer):
    """Fold eval-BN (+ GAT bias) into (scale, shift) and fold A into W (W_aug = [W | W@A])."""
    scale = layer["gamma"] * jax.lax.rsqrt(layer["var"] + BN_EPS)        # [1, hidden]
    shift = (layer["bias"] - layer["mean"]) * scale + layer["beta"]      # [1, hidden]
    a_packed = _pack_attention(layer["att_src"], layer["att_dst"])       # [H*D, 2H]
    w_aug = jnp.concatenate([layer["w"], layer["w"] @ a_packed], axis=1) # [Fin, H*D+2H]
    return (w_aug.astype(jnp.bfloat16),            # MXU operand -> bf16
            scale.astype(jnp.float32),
            shift.astype(jnp.float32))


def gnn_forward(x, adj, layers, fc_w, fc_b, num_heads, head_dim, num_classes):
    n, f = x.shape
    hidden = num_heads * head_dim
    n_pad = ((n + 7) // 8) * 8                        # sublane-align node dim
    c_pad = ((num_classes + 127) // 128) * 128        # lane-dense output slab

    x_p = jnp.zeros((n_pad, f), jnp.float32).at[:n, :].set(x)
    adj_p = jnp.zeros((n_pad, n_pad), jnp.int8).at[:n, :n].set(adj.astype(jnp.int8))
    fcw_p = jnp.zeros((hidden, c_pad), jnp.bfloat16).at[:, :num_classes].set(
        fc_w.astype(jnp.bfloat16))
    fcb_p = jnp.zeros((1, c_pad), jnp.float32).at[:, :num_classes].set(fc_b)

    args = [x_p, adj_p]
    for layer in layers:
        args.extend(_fold_layer_params(layer))
    args.extend([fcw_p, fcb_p])

    kernel = functools.partial(_gnn_fused_kernel, num_layers=len(layers),
                               num_heads=num_heads, head_dim=head_dim)
    out_p = pl.pallas_call(
        kernel,
        out_shape=jax.ShapeDtypeStruct((n_pad, c_pad), jnp.float32),
        grid=(1,),
        in_specs=[_full_spec(a.shape) for a in args],
        out_specs=_full_spec((n_pad, c_pad)),
        compiler_params=pltpu.CompilerParams(
            dimension_semantics=("arbitrary",),
            # Plenty for these shapes and safe on v7x's 64 MiB physical VMEM.
            vmem_limit_bytes=32 * 1024 * 1024),
    )(*args)
    # TODO(synk): for large graphs, tile attention over destination-node blocks
    # (grid over N_dst marked "parallel" for v7x megacore, adj/activation tiles
    # double-buffered via BlockSpec, generation-specific tile sizes for the
    # 64 vs 128 MiB VMEM budget) instead of the fully-resident dense form; that
    # requires per-layer kernels or HBM writeback of h between layers.
    return out_p[:n, :num_classes]


# --------------------------- parameter / input setup ------------------------ #

def init_params(key, feature_dim, hidden, heads, num_layers, num_classes):
    head_dim = hidden // heads
    layers = []
    in_dim = feature_dim
    for _ in range(num_layers):
        key, k1, k2, k3, k4, k5, k6, k7, k8 = jax.random.split(key, 9)
        layers.append(dict(
            w=0.2 * jax.random.normal(k1, (in_dim, hidden), jnp.float32),
            att_src=0.2 * jax.random.normal(k2, (heads, head_dim), jnp.float32),
            att_dst=0.2 * jax.random.normal(k3, (heads, head_dim), jnp.float32),
            bias=0.1 * jax.random.normal(k4, (1, hidden), jnp.float32),
            gamma=1.0 + 0.1 * jax.random.normal(k5, (1, hidden), jnp.float32),
            beta=0.1 * jax.random.normal(k6, (1, hidden), jnp.float32),
            mean=0.1 * jax.random.normal(k7, (1, hidden), jnp.float32),
            var=0.5 + jnp.abs(jax.random.normal(k8, (1, hidden), jnp.float32)),
        ))
        in_dim = hidden
    key, kw, kb = jax.random.split(key, 3)
    fc_w = 0.2 * jax.random.normal(kw, (hidden, num_classes), jnp.float32)
    fc_b = 0.1 * jax.random.normal(kb, (1, num_classes), jnp.float32)
    return layers, fc_w, fc_b


def edges_to_adj(edge_index, num_nodes):
    src, dst = edge_index[0], edge_index[1]
    adj = jnp.zeros((num_nodes, num_nodes), jnp.float32)
    adj = adj.at[dst, src].set(1.0)                  # adj[dst, src] = edge src->dst
    adj = jnp.maximum(adj, jnp.eye(num_nodes, dtype=jnp.float32))  # self-loops
    return adj


if __name__ == "__main__":
    # Small, module-consistent shapes.
    N = 16               # number of graph nodes
    FEATURE_DIM = 8
    GNN_HIDDEN = 32
    NUM_LAYERS = 2
    NUM_HEADS = 4
    HEAD_DIM = GNN_HIDDEN // NUM_HEADS
    NUM_CLASSES = 5

    key = jax.random.PRNGKey(0)
    key, kx = jax.random.split(key)
    x = jax.random.normal(kx, (N, FEATURE_DIM), jnp.float32)

    # Deterministic graph: each node i has incoming edges from i+1, i+3, i+7 (mod N).
    base = jnp.arange(N, dtype=jnp.int32)
    src = jnp.concatenate([(base + 1) % N, (base + 3) % N, (base + 7) % N])
    dst = jnp.concatenate([base, base, base])
    edge_index = jnp.stack([src, dst], axis=0)       # [2, 48]
    adj = edges_to_adj(edge_index, N)

    layers, fc_w, fc_b = init_params(key, FEATURE_DIM, GNN_HIDDEN, NUM_HEADS,
                                     NUM_LAYERS, NUM_CLASSES)

    out = gnn_forward(x, adj, layers, fc_w, fc_b, NUM_HEADS, HEAD_DIM, NUM_CLASSES)
    out = jax.block_until_ready(out)
    assert out.shape == (N, NUM_CLASSES) and out.dtype == jnp.float32
    assert bool(jnp.all(jnp.isfinite(out)))
    print("KERNEL_OK")
</pallas_src>

<mosaic_0001>
module attributes {stable_mosaic.version = 11 : i64} {
  func.func @_gnn_fused_kernel(%arg0: i32, %arg1: memref<16x8xf32, #tpu.memory_space<vmem>>, %arg2: memref<16x16xi8, #tpu.memory_space<vmem>>, %arg3: memref<8x40xbf16, #tpu.memory_space<vmem>>, %arg4: memref<1x32xf32, #tpu.memory_space<vmem>>, %arg5: memref<1x32xf32, #tpu.memory_space<vmem>>, %arg6: memref<32x40xbf16, #tpu.memory_space<vmem>>, %arg7: memref<1x32xf32, #tpu.memory_space<vmem>>, %arg8: memref<1x32xf32, #tpu.memory_space<vmem>>, %arg9: memref<32x128xbf16, #tpu.memory_space<vmem>>, %arg10: memref<1x128xf32, #tpu.memory_space<vmem>>, %arg11: memref<16x128xf32, #tpu.memory_space<vmem>>) attributes {dimension_semantics = [#tpu.dimension_semantics<arbitrary>], iteration_bounds = array<i64: 1>, scalar_prefetch = 0 : i64, scratch_operands = 0 : i64, tpu.core_type = #tpu.core_type<tc>, window_params = [{pipeline_mode = #tpu.pipeline_mode<synchronous>, transform_indices = @transform_0, window_bounds = array<i64: 16, 8>}, {pipeline_mode = #tpu.pipeline_mode<synchronous>, transform_indices = @transform_1, window_bounds = array<i64: 16, 16>}, {pipeline_mode = #tpu.pipeline_mode<synchronous>, transform_indices = @transform_2, window_bounds = array<i64: 8, 40>}, {pipeline_mode = #tpu.pipeline_mode<synchronous>, transform_indices = @transform_3, window_bounds = array<i64: 1, 32>}, {pipeline_mode = #tpu.pipeline_mode<synchronous>, transform_indices = @transform_4, window_bounds = array<i64: 1, 32>}, {pipeline_mode = #tpu.pipeline_mode<synchronous>, transform_indices = @transform_5, window_bounds = array<i64: 32, 40>}, {pipeline_mode = #tpu.pipeline_mode<synchronous>, transform_indices = @transform_6, window_bounds = array<i64: 1, 32>}, {pipeline_mode = #tpu.pipeline_mode<synchronous>, transform_indices = @transform_7, window_bounds = array<i64: 1, 32>}, {pipeline_mode = #tpu.pipeline_mode<synchronous>, transform_indices = @transform_8, window_bounds = array<i64: 32, 128>}, {pipeline_mode = #tpu.pipeline_mode<synchronous>, transform_indices = @transform_9, window_bounds = array<i64: 1, 128>}, {pipeline_mode = #tpu.pipeline_mode<synchronous>, transform_indices = @transform_10, window_bounds = array<i64: 16, 128>}]} {
    %c0 = arith.constant 0 : index
    %c0_0 = arith.constant 0 : index
    %0 = vector.load %arg2[%c0, %c0_0] : memref<16x16xi8, #tpu.memory_space<vmem>>, vector<16x16xi8>
    %1 = arith.sitofp %0 : vector<16x16xi8> to vector<16x16xf32>
    %cst = arith.constant 0.000000e+00 : f32
    %2 = vector.broadcast %cst : f32 to vector<16x16xf32>
    %3 = arith.cmpf ogt, %1, %2 : vector<16x16xf32>
    %cst_1 = arith.constant 0.000000e+00 : f32
    %cst_2 = arith.constant -1.000000e+30 : f32
    %4 = vector.broadcast %cst_1 : f32 to vector<16x16xf32>
    %5 = vector.broadcast %cst_2 : f32 to vector<16x16xf32>
    %6 = arith.select %3, %4, %5 : vector<16x16xi1>, vector<16x16xf32>
    %c0_3 = arith.constant 0 : index
    %c0_4 = arith.constant 0 : index
    %7 = vector.load %arg1[%c0_3, %c0_4] : memref<16x8xf32, #tpu.memory_space<vmem>>, vector<16x8xf32>
    %8 = arith.truncf %7 : vector<16x8xf32> to vector<16x8xbf16>
    %c0_5 = arith.constant 0 : index
    %c0_6 = arith.constant 0 : index
    %9 = vector.load %arg3[%c0_5, %c0_6] : memref<8x40xbf16, #tpu.memory_space<vmem>>, vector<8x40xbf16>
    %cst_7 = arith.constant dense<0.000000e+00> : vector<16x40xf32>
    %10 = tpu.matmul %8, %9, %cst_7 {dimension_numbers = #tpu.dot_dimension_numbers<[1], [0], [0], [1], [0, 0, 1, 1], [], []>} : vector<16x8xbf16>, vector<8x40xbf16>, vector<16x40xf32> -> vector<16x40xf32>
    %11 = vector.extract_strided_slice %10 {offsets = [0, 0], sizes = [16, 32], strides = [1, 1]} : vector<16x40xf32> to vector<16x32xf32>
    %12 = vector.extract_strided_slice %10 {offsets = [0, 32], sizes = [16, 8], strides = [1, 1]} : vector<16x40xf32> to vector<16x8xf32>
    %13 = tpu.transpose %12, [1, 0] : vector<16x8xf32> -> vector<8x16xf32>
    %14 = vector.extract_strided_slice %13 {offsets = [0, 0], sizes = [4, 16], strides = [1, 1]} : vector<8x16xf32> to vector<4x16xf32>
    %15 = vector.extract_strided_slice %13 {offsets = [4, 0], sizes = [4, 16], strides = [1, 1]} : vector<8x16xf32> to vector<4x16xf32>
    %16 = vector.shape_cast %15 : vector<4x16xf32> to vector<4x16x1xf32>
    %17 = vector.shape_cast %14 : vector<4x16xf32> to vector<4x1x16xf32>
    %18 = vector.broadcast %16 : vector<4x16x1xf32> to vector<4x16x16xf32>
    %19 = vector.broadcast %17 : vector<4x1x16xf32> to vector<4x16x16xf32>
    %20 = arith.addf %18, %19 : vector<4x16x16xf32>
    %cst_8 = arith.constant 2.000000e-01 : f32
    %21 = vector.broadcast %cst_8 : f32 to vector<4x16x16xf32>
    %22 = arith.mulf %21, %20 : vector<4x16x16xf32>
    %23 = arith.maximumf %20, %22 : vector<4x16x16xf32>
    %24 = vector.shape_cast %6 : vector<16x16xf32> to vector<1x16x16xf32>
    %25 = vector.broadcast %24 : vector<1x16x16xf32> to vector<4x16x16xf32>
    %26 = arith.addf %23, %25 : vector<4x16x16xf32>
    %cst_9 = arith.constant dense<0xFF800000> : vector<4x16xf32>
    %27 = vector.multi_reduction <maximumf>, %26, %cst_9 [2] : vector<4x16x16xf32> to vector<4x16xf32>
    %28 = vector.shape_cast %27 : vector<4x16xf32> to vector<4x16x1xf32>
    %29 = vector.broadcast %28 : vector<4x16x1xf32> to vector<4x16x16xf32>
    %30 = arith.subf %26, %29 : vector<4x16x16xf32>
    %31 = math.exp %30 : vector<4x16x16xf32>
    %cst_10 = arith.constant dense<0.000000e+00> : vector<4x16xf32>
    %32 = vector.multi_reduction <add>, %31, %cst_10 [2] : vector<4x16x16xf32> to vector<4x16xf32>
    %33 = vector.shape_cast %32 : vector<4x16xf32> to vector<4x16x1xf32>
    %34 = arith.truncf %11 : vector<16x32xf32> to vector<16x32xbf16>
    %35 = vector.shape_cast %34 : vector<16x32xbf16> to vector<16x4x8xbf16>
    %36 = tpu.transpose %35, [1, 0, 2] : vector<16x4x8xbf16> -> vector<4x16x8xbf16>
    %37 = arith.truncf %31 : vector<4x16x16xf32> to vector<4x16x16xbf16>
    "tpu.trace_start"() <{level = 10 : i32, message = "hij,hjd->hid"}> : () -> ()
    %cst_11 = arith.constant dense<0.000000e+00> : vector<4x16x8xf32>
    %38 = tpu.matmul %37, %36, %cst_11 {dimension_numbers = #tpu.dot_dimension_numbers<[2], [1], [1], [2], [0, 0, 0, 1, 1, 2], [0], [0]>} : vector<4x16x16xbf16>, vector<4x16x8xbf16>, vector<4x16x8xf32> -> vector<4x16x8xf32>
    "tpu.trace_stop"() : () -> ()
    %39 = tpu.reciprocal %33 : vector<4x16x1xf32> -> vector<4x16x1xf32>
    %40 = vector.broadcast %39 : vector<4x16x1xf32> to vector<4x16x8xf32>
    %41 = arith.mulf %38, %40 : vector<4x16x8xf32>
    %42 = tpu.transpose %41, [1, 0, 2] : vector<4x16x8xf32> -> vector<16x4x8xf32>
    %43 = vector.shape_cast %42 : vector<16x4x8xf32> to vector<16x32xf32>
    %c0_12 = arith.constant 0 : index
    %c0_13 = arith.constant 0 : index
    %44 = vector.load %arg4[%c0_12, %c0_13] : memref<1x32xf32, #tpu.memory_space<vmem>>, vector<1x32xf32>
    %45 = vector.broadcast %44 : vector<1x32xf32> to vector<16x32xf32>
    %46 = arith.mulf %43, %45 : vector<16x32xf32>
    %c0_14 = arith.constant 0 : index
    %c0_15 = arith.constant 0 : index
    %47 = vector.load %arg5[%c0_14, %c0_15] : memref<1x32xf32, #tpu.memory_space<vmem>>, vector<1x32xf32>
    %48 = vector.broadcast %47 : vector<1x32xf32> to vector<16x32xf32>
    %49 = arith.addf %46, %48 : vector<16x32xf32>
    %cst_16 = arith.constant 0.000000e+00 : f32
    %50 = vector.broadcast %cst_16 : f32 to vector<16x32xf32>
    %51 = arith.cmpf ogt, %49, %50 : vector<16x32xf32>
    %cst_17 = arith.constant 0.000000e+00 : f32
    %52 = vector.broadcast %cst_17 : f32 to vector<16x32xf32>
    %53 = arith.minimumf %49, %52 : vector<16x32xf32>
    %54 = math.exp %53 : vector<16x32xf32>
    %cst_18 = arith.constant 1.000000e+00 : f32
    %55 = vector.broadcast %cst_18 : f32 to vector<16x32xf32>
    %56 = arith.subf %54, %55 : vector<16x32xf32>
    %57 = arith.select %51, %49, %56 : vector<16x32xi1>, vector<16x32xf32>
    %58 = arith.truncf %57 : vector<16x32xf32> to vector<16x32xbf16>
    %c0_19 = arith.constant 0 : index
    %c0_20 = arith.constant 0 : index
    %59 = vector.load %arg6[%c0_19, %c0_20] : memref<32x40xbf16, #tpu.memory_space<vmem>>, vector<32x40xbf16>
    %cst_21 = arith.constant dense<0.000000e+00> : vector<16x40xf32>
    %60 = tpu.matmul %58, %59, %cst_21 {dimension_numbers = #tpu.dot_dimension_numbers<[1], [0], [0], [1], [0, 0, 1, 1], [], []>} : vector<16x32xbf16>, vector<32x40xbf16>, vector<16x40xf32> -> vector<16x40xf32>
    %61 = vector.extract_strided_slice %60 {offsets = [0, 0], sizes = [16, 32], strides = [1, 1]} : vector<16x40xf32> to vector<16x32xf32>
    %62 = vector.extract_strided_slice %60 {offsets = [0, 32], sizes = [16, 8], strides = [1, 1]} : vector<16x40xf32> to vector<16x8xf32>
    %63 = tpu.transpose %62, [1, 0] : vector<16x8xf32> -> vector<8x16xf32>
    %64 = vector.extract_strided_slice %63 {offsets = [0, 0], sizes = [4, 16], strides = [1, 1]} : vector<8x16xf32> to vector<4x16xf32>
    %65 = vector.extract_strided_slice %63 {offsets = [4, 0], sizes = [4, 16], strides = [1, 1]} : vector<8x16xf32> to vector<4x16xf32>
    %66 = vector.shape_cast %65 : vector<4x16xf32> to vector<4x16x1xf32>
    %67 = vector.shape_cast %64 : vector<4x16xf32> to vector<4x1x16xf32>
    %68 = vector.broadcast %66 : vector<4x16x1xf32> to vector<4x16x16xf32>
    %69 = vector.broadcast %67 : vector<4x1x16xf32> to vector<4x16x16xf32>
    %70 = arith.addf %68, %69 : vector<4x16x16xf32>
    %cst_22 = arith.constant 2.000000e-01 : f32
    %71 = vector.broadcast %cst_22 : f32 to vector<4x16x16xf32>
    %72 = arith.mulf %71, %70 : vector<4x16x16xf32>
    %73 = arith.maximumf %70, %72 : vector<4x16x16xf32>
    %74 = vector.shape_cast %6 : vector<16x16xf32> to vector<1x16x16xf32>
    %75 = vector.broadcast %74 : vector<1x16x16xf32> to vector<4x16x16xf32>
    %76 = arith.addf %73, %75 : vector<4x16x16xf32>
    %cst_23 = arith.constant dense<0xFF800000> : vector<4x16xf32>
    %77 = vector.multi_reduction <maximumf>, %76, %cst_23 [2] : vector<4x16x16xf32> to vector<4x16xf32>
    %78 = vector.shape_cast %77 : vector<4x16xf32> to vector<4x16x1xf32>
    %79 = vector.broadcast %78 : vector<4x16x1xf32> to vector<4x16x16xf32>
    %80 = arith.subf %76, %79 : vector<4x16x16xf32>
    %81 = math.exp %80 : vector<4x16x16xf32>
    %cst_24 = arith.constant dense<0.000000e+00> : vector<4x16xf32>
    %82 = vector.multi_reduction <add>, %81, %cst_24 [2] : vector<4x16x16xf32> to vector<4x16xf32>
    %83 = vector.shape_cast %82 : vector<4x16xf32> to vector<4x16x1xf32>
    %84 = arith.truncf %61 : vector<16x32xf32> to vector<16x32xbf16>
    %85 = vector.shape_cast %84 : vector<16x32xbf16> to vector<16x4x8xbf16>
    %86 = tpu.transpose %85, [1, 0, 2] : vector<16x4x8xbf16> -> vector<4x16x8xbf16>
    %87 = arith.truncf %81 : vector<4x16x16xf32> to vector<4x16x16xbf16>
    "tpu.trace_start"() <{level = 10 : i32, message = "hij,hjd->hid"}> : () -> ()
    %cst_25 = arith.constant dense<0.000000e+00> : vector<4x16x8xf32>
    %88 = tpu.matmul %87, %86, %cst_25 {dimension_numbers = #tpu.dot_dimension_numbers<[2], [1], [1], [2], [0, 0, 0, 1, 1, 2], [0], [0]>} : vector<4x16x16xbf16>, vector<4x16x8xbf16>, vector<4x16x8xf32> -> vector<4x16x8xf32>
    "tpu.trace_stop"() : () -> ()
    %89 = tpu.reciprocal %83 : vector<4x16x1xf32> -> vector<4x16x1xf32>
    %90 = vector.broadcast %89 : vector<4x16x1xf32> to vector<4x16x8xf32>
    %91 = arith.mulf %88, %90 : vector<4x16x8xf32>
    %92 = tpu.transpose %91, [1, 0, 2] : vector<4x16x8xf32> -> vector<16x4x8xf32>
    %93 = vector.shape_cast %92 : vector<16x4x8xf32> to vector<16x32xf32>
    %c0_26 = arith.constant 0 : index
    %c0_27 = arith.constant 0 : index
    %94 = vector.load %arg7[%c0_26, %c0_27] : memref<1x32xf32, #tpu.memory_space<vmem>>, vector<1x32xf32>
    %95 = vector.broadcast %94 : vector<1x32xf32> to vector<16x32xf32>
    %96 = arith.mulf %93, %95 : vector<16x32xf32>
    %c0_28 = arith.constant 0 : index
    %c0_29 = arith.constant 0 : index
    %97 = vector.load %arg8[%c0_28, %c0_29] : memref<1x32xf32, #tpu.memory_space<vmem>>, vector<1x32xf32>
    %98 = vector.broadcast %97 : vector<1x32xf32> to vector<16x32xf32>
    %99 = arith.addf %96, %98 : vector<16x32xf32>
    %cst_30 = arith.constant 0.000000e+00 : f32
    %100 = vector.broadcast %cst_30 : f32 to vector<16x32xf32>
    %101 = arith.cmpf ogt, %99, %100 : vector<16x32xf32>
    %cst_31 = arith.constant 0.000000e+00 : f32
    %102 = vector.broadcast %cst_31 : f32 to vector<16x32xf32>
    %103 = arith.minimumf %99, %102 : vector<16x32xf32>
    %104 = math.exp %103 : vector<16x32xf32>
    %cst_32 = arith.constant 1.000000e+00 : f32
    %105 = vector.broadcast %cst_32 : f32 to vector<16x32xf32>
    %106 = arith.subf %104, %105 : vector<16x32xf32>
    %107 = arith.select %101, %99, %106 : vector<16x32xi1>, vector<16x32xf32>
    %108 = arith.truncf %107 : vector<16x32xf32> to vector<16x32xbf16>
    %c0_33 = arith.constant 0 : index
    %c0_34 = arith.constant 0 : index
    %109 = vector.load %arg9[%c0_33, %c0_34] : memref<32x128xbf16, #tpu.memory_space<vmem>>, vector<32x128xbf16>
    %cst_35 = arith.constant dense<0.000000e+00> : vector<16x128xf32>
    %110 = tpu.matmul %108, %109, %cst_35 {dimension_numbers = #tpu.dot_dimension_numbers<[1], [0], [0], [1], [0, 0, 1, 1], [], []>} : vector<16x32xbf16>, vector<32x128xbf16>, vector<16x128xf32> -> vector<16x128xf32>
    %c0_36 = arith.constant 0 : index
    %c0_37 = arith.constant 0 : index
    %111 = vector.load %arg10[%c0_36, %c0_37] : memref<1x128xf32, #tpu.memory_space<vmem>>, vector<1x128xf32>
    %112 = vector.broadcast %111 : vector<1x128xf32> to vector<16x128xf32>
    %113 = arith.addf %110, %112 : vector<16x128xf32>
    %c0_38 = arith.constant 0 : index
    %c0_39 = arith.constant 0 : index
    %114 = vector.load %arg11[%c0_38, %c0_39] : memref<16x128xf32, #tpu.memory_space<vmem>>, vector<16x128xf32>
    tpu.vector_store %arg11[%c0_38, %c0_39], %113 {strides = array<i32>} : memref<16x128xf32, #tpu.memory_space<vmem>>, vector<16x128xf32>,
    return
  }
  func.func @transform_0(%arg0: i32) -> (i32, i32) {
    %c0_i32 = arith.constant 0 : i32
    %c0_i32_0 = arith.constant 0 : i32
    %c0_i32_1 = arith.constant 0 : i32
    return %c0_i32, %c0_i32_0 : i32, i32
  }
  func.func @transform_1(%arg0: i32) -> (i32, i32) {
    %c0_i32 = arith.constant 0 : i32
    %c0_i32_0 = arith.constant 0 : i32
    %c0_i32_1 = arith.constant 0 : i32
    return %c0_i32, %c0_i32_0 : i32, i32
  }
  func.func @transform_2(%arg0: i32) -> (i32, i32) {
    %c0_i32 = arith.constant 0 : i32
    %c0_i32_0 = arith.constant 0 : i32
    %c0_i32_1 = arith.constant 0 : i32
    return %c0_i32, %c0_i32_0 : i32, i32
  }
  func.func @transform_3(%arg0: i32) -> (i32, i32) {
    %c0_i32 = arith.constant 0 : i32
    %c0_i32_0 = arith.constant 0 : i32
    %c0_i32_1 = arith.constant 0 : i32
    return %c0_i32, %c0_i32_0 : i32, i32
  }
  func.func @transform_4(%arg0: i32) -> (i32, i32) {
    %c0_i32 = arith.constant 0 : i32
    %c0_i32_0 = arith.constant 0 : i32
    %c0_i32_1 = arith.constant 0 : i32
    return %c0_i32, %c0_i32_0 : i32, i32
  }
  func.func @transform_5(%arg0: i32) -> (i32, i32) {
    %c0_i32 = arith.constant 0 : i32
    %c0_i32_0 = arith.constant 0 : i32
    %c0_i32_1 = arith.constant 0 : i32
    return %c0_i32, %c0_i32_0 : i32, i32
  }
  func.func @transform_6(%arg0: i32) -> (i32, i32) {
    %c0_i32 = arith.constant 0 : i32
    %c0_i32_0 = arith.constant 0 : i32
    %c0_i32_1 = arith.constant 0 : i32
    return %c0_i32, %c0_i32_0 : i32, i32
  }
  func.func @transform_7(%arg0: i32) -> (i32, i32) {
    %c0_i32 = arith.constant 0 : i32
    %c0_i32_0 = arith.constant 0 : i32
    %c0_i32_1 = arith.constant 0 : i32
    return %c0_i32, %c0_i32_0 : i32, i32
  }
  func.func @transform_8(%arg0: i32) -> (i32, i32) {
    %c0_i32 = arith.constant 0 : i32
    %c0_i32_0 = arith.constant 0 : i32
    %c0_i32_1 = arith.constant 0 : i32
    return %c0_i32, %c0_i32_0 : i32, i32
  }
  func.func @transform_9(%arg0: i32) -> (i32, i32) {
    %c0_i32 = arith.constant 0 : i32
    %c0_i32_0 = arith.constant 0 : i32
    %c0_i32_1 = arith.constant 0 : i32
    return %c0_i32, %c0_i32_0 : i32, i32
  }
  func.func @transform_10(%arg0: i32) -> (i32, i32) {
    %c0_i32 = arith.constant 0 : i32
    %c0_i32_0 = arith.constant 0 : i32
    %c0_i32_1 = arith.constant 0 : i32
    return %c0_i32, %c0_i32_0 : i32, i32
  }
}

</mosaic_0001>

<bundles_post_ra>
// kernel: tpu_custom_call.1
= control target key start
LH: loop header
LB: loop body
LE: loop exit
PB: predicated region body
PF: predicated region fallthrough
CT: control target
= control target key end

     0   :  { %15 = vsyncpa [#allocation3], 0  ;;  %s3189_s0 = inlined_call_operand.vmem [shape: f32[16,8], index: 0, kind: input, shape index: {}]   ;;  %s3190_s1 = inlined_call_operand.hbm [shape: s8[16,16], index: 1, kind: input, shape index: {}]   ;;  %s3191_s2 = inlined_call_operand.hbm [shape: bf16[8,40], index: 2, kind: input, shape index: {}]   ;;  %s3192_s3 = inlined_call_operand.vmem [shape: f32[1,32], index: 3, kind: input, shape index: {}]   ;;  %s3193_s4 = inlined_call_operand.vmem [shape: f32[1,32], index: 4, kind: input, shape index: {}]   ;;  %s3194_s5 = inlined_call_operand.vmem [shape: bf16[32,40], index: 5, kind: input, shape index: {}]   ;;  %s3195_s6 = inlined_call_operand.vmem [shape: f32[1,32], index: 6, kind: input, shape index: {}]   ;;  %s3196_s7 = inlined_call_operand.vmem [shape: f32[1,32], index: 7, kind: input, shape index: {}]   ;;  %s3197_s8 = inlined_call_operand.vmem [shape: bf16[32,128], index: 8, kind: input, shape index: {}]   ;;  %s3198_s9 = inlined_call_operand.vmem [shape: f32[1,128], index: 9, kind: input, shape index: {}]   ;;  %s3199_s10 = inlined_call_operand.hbm [shape: f32[16,128], index: 10, kind: output, shape index: {}]  }
   0x1   :  { %16 = vsyncpa [#allocation6], 0 }
   0x2   :  { %17 = vsyncpa [#allocation4], 0  ;;  %s2656_s13 = smov [#allocation2]   ;;  %s2584_s17 = scalar_lea.hbm %s3190_s1, 64 }
   0x3   :  { %s25_s14 = sshll.u32 %s2656_s13, 4  ;;  %p2585_p0 = scmp.ne.s32.totalorder %s3190_s1, %s2584_s17  ;;  %s26_s14 = int_to_ptr.vmem [resolvable:$true] %s25_s14 }
   0x4   :  { %p2588_p1 = scmp.lt.u32.totalorder %s2584_s17, %s3190_s1 }
   0x6   :  { %p2590_p2 = pnand %p2588_p1, %p2585_p0 }
   0x8   :  { %2593 = shalt.err (!%p2590_p2)
}
   0x9   :  { %s2594_s22 = scalar_lea.vmem %s26_s14, 64  ;;  %p2599_p4 = scmp.lt.s32.totalorder %s26_s14, %s26_s14 }
   0xa   :  { %p2595_p3 = scmp.ne.s32.totalorder %s26_s14, %s2594_s22  ;;  %p2600_p5 = scmp.lt.s32.totalorder %s2594_s22, %s2594_s22 }
   0xc   :  { %p2601_p6 = por %p2600_p5, %p2599_p4 }
   0xe   :  { %p2602_p7 = pnand %p2601_p6, %p2595_p3 }
  0x10   :  { %2605 = shalt.err (!%p2602_p7)
}
  0x11   :  { %s2657_s23 = smov 32   ;;  %s2658_s24 = smov 2  }
  0x12   :  { %31 = dma.hbm_to_vmem [thread:$0]  %s3190_s1, 64, %s26_s14, [#allocation3], %s2657_s23, %s2657_s23, %s2658_s24  }
  0x13   :  { %s2659_s27 = smov [#allocation5]   ;;  %s2606_s11 = scalar_lea.hbm %s3191_s2, 64 }
  0x14   :  { %s38_s28 = sshll.u32 %s2659_s27, 4  ;;  %p2607_p8 = scmp.ne.s32.totalorder %s3191_s2, %s2606_s11  ;;  %s39_s28 = int_to_ptr.vmem [resolvable:$true] %s38_s28 }
  0x15   :  { %p2610_p9 = scmp.lt.u32.totalorder %s2606_s11, %s3191_s2 }
  0x17   :  { %p2612_p10 = pnand %p2610_p9, %p2607_p8 }
  0x19   :  { %2615 = shalt.err (!%p2612_p10)
}
  0x1a   :  { %s2616_s17 = scalar_lea.vmem %s39_s28, 64  ;;  %p2621_p12 = scmp.lt.s32.totalorder %s39_s28, %s39_s28 }
  0x1b   :  { %p2617_p11 = scmp.ne.s32.totalorder %s39_s28, %s2616_s17  ;;  %p2622_p13 = scmp.lt.s32.totalorder %s2616_s17, %s2616_s17 }
  0x1d   :  { %p2623_p0 = por %p2622_p13, %p2621_p12 }
  0x1f   :  { %p2624_p1 = pnand %p2623_p0, %p2617_p11 }
  0x21   :  { %2627 = shalt.err (!%p2624_p1)
}
  0x22   :  { %41 = dma.hbm_to_vmem [thread:$0]  %s3191_s2, 64, %s39_s28, [#allocation6]  }
  0x23   :  { %2650 = dma.done.wait [#allocation3], 64  }
  0x24   :  { %2651 = vsyncadd [#allocation3], 4294967232 }
  0x25   :  { %2652 = dma.done.wait [#allocation6], 64  }
  0x26   :  { %2653 = vsyncadd [#allocation6], 4294967232  ;;  %v2660_v0 = vmov 0.0   ;;  %vm2661_vm0 = vmmov 0   ;;  %vm81_vm1 = vcmask 1043456   ;;  %v73_v2 = vld [vmem:[%s3189_s0] sm:$0xff]  ;;  %v166_v13 = vlaneseq }
  0x27   :  { %2418 = vmatprep.subr.bf16.mxu0 %v2660_v0  ;;  %2420 = vmatprep.mubr.msk.bf16.mxu0 %vm2661_vm0, %v2660_v0  ;;  %v76_v1 = vld [vmem:[#allocation5] sm:$0xf]  ;;  %v74_v3 = vld [vmem:[%s3189_s0 + $0x8] sm:$0xff]  ;;  %vm77_vm2 = vcmask 64512   ;;  %s2662_s21 = smov 96   ;;  %s2663_s0 = smov 120  }
  0x28   :  { %2424 = vmatprep.subr.bf16.mxu1 %v2660_v0  ;;  %2426 = vmatprep.mubr.msk.bf16.mxu1 %vm2661_vm0, %v2660_v0  ;;  %v83_v4 = vsel %vm81_vm1, %v76_v1, 0  ;;  %v75_v5 = vpack.c.bf16 %v74_v3, %v73_v2  ;;  %v2775_v14 = vshrl.u32 %v166_v13, 7  ;;  %s2664_s22 = smov 104   ;;  %s2665_s23 = smov 112   ;;  %v2666_v24 = vmov 1966171168  }
  0x29   :  { %2419 = vmatpush3.bf16.msra.mxu0 %v83_v4  ;;  %v212_v25 = vunpack.c.l.s4 %v2666_v24  ;;  %v2391_v28 = vld [vmem:[#allocation2] sm:$0xf]   ;;  %v2667_v47 = vmov -1e+30   ;;  %vm287_vm5 = vcmask 130048   ;;  %s2671_s24 = smov 16  }
  0x2a   :  { %2430 = vmatprep.subr.bf16.mxu0 %v2660_v0  ;;  %v168_v15 = vsub.s32 4, %v2775_v14  ;;  %v179_v18 = vsub.s32 5, %v2775_v14  ;;  %v190_v20 = vsub.s32 6, %v2775_v14  ;;  %v201_v22 = vsub.s32 7, %v2775_v14  ;;  %s2672_s25 = smov 8   ;;  %s2673_s26 = smov 24  }
  0x2b   :  { %v213_v26 = vunpack.c.0.s8 %v212_v25  ;;  %v2393_v30 = vunpack.c.1.s8 %v2391_v28  ;;  %v2392_v31 = vunpack.c.0.s8 %v2391_v28  ;;  %v2801_v33 = vsub.s32 0, %v2775_v14 }
  0x2c   :  { %2421 = vmatmul.mubr.msk.bf16.vlgmr.msra.gmra.mrb[0].mxu0 %vm77_vm2, %v75_v5  ;;  %vm1134_vm6 = vcmask 195584   ;;  %vm1184_vm9 = vcmask 261120  }
  0x2d   :  { %2432 = vmatprep.mubr.msk.bf16.mxu0 %vm2661_vm0, %v2660_v0  ;;  %v2796_v27 = vsub.s32 %v213_v26, %v2775_v14  ;;  %v68_v35 = vcvt.s32.f32 %v2393_v30  ;;  %v67_v36 = vcvt.s32.f32 %v2392_v31  ;;  %v2669_v31 = vmov 1934713408  }
  0x2f   :  { %vm70_vm3 = vcmp.gt.f32.partialorder %v68_v35, 0.0  ;;  %vm69_vm4 = vcmp.gt.f32.partialorder %v67_v36, 0.0  ;;  %v2670_v36 = vmov 0  }
  0x30   :  { %v2806_v48 = vsel %vm70_vm3, 0.0, %v2667_v47  ;;  %v2808_v52 = vsel %vm69_vm4, 0.0, %v2667_v47 }
  0xff   :  { %v119_v6 = vpop.f32.mrb[0].mxu0 }
 0x100   :  { %128 = vrot.lane.b32.xlu0 %v119_v6, %s2662_s21  ;;  %v2422_v7 = vpop.f32.mrb[1].mxu0 }
 0x101   :  { %v122_v8 = vpop.f32.mrb[2].mxu0 }
 0x102   :  { %v2772_v9 = vpack.c.bf16 %v122_v8, %v119_v6  ;;  %v2423_v10 = vpop.f32.mrb[3].mxu0 }
 0x104   :  { %130 = vrot.lane.b32.xlu0 %v122_v8, %s2662_s21  ;;  %v372_v47 = vshrl.u32 %v2772_v9, 16 }
 0x172   :  { %v129_v11 = vpop.permute.xlu0 %128 }
 0x173   :  { %134 = vxpose.xlu1.b32.start [1/2] (short) (narrow) %v129_v11, 8 }
 0x176   :  { %v131_v12 = vpop.permute.xlu0 %130 }
 0x177   :  { %135 = vxpose.xlu1.b32.end [2/2] (short) (narrow) %v131_v12, 8 }
 0x1f3   :  { %v150_v16 = vpop.trf.xlu1 }
 0x1f4   :  { %v169_v17 = vrot.slane %v150_v16, %v168_v15  ;;  %v180_v19 = vrot.slane %v150_v16, %v179_v18  ;;  %v191_v21 = vrot.slane %v150_v16, %v190_v20  ;;  %v202_v23 = vrot.slane %v150_v16, %v201_v22 }
 0x1f5   :  { %v217_v29 = vrot.slane %v150_v16, %v2796_v27  ;;  %v2668_v16 = vmov 1983009808  }
 0x1f6   :  { %175 = vbcast.lane.b32.xlu1 %v169_v17, 264  ;;  %171 = vbcast.lane.b32.xlu0 %v169_v17, 256  ;;  %v392_v17 = vunpack.c.l.s4 %v2668_v16 }
 0x1f7   :  { %v225_v32 = vrot.slane %v217_v29, %v2796_v27  ;;  %v218_v34 = vcombine.high %v217_v29, %v217_v29 }
 0x1f8   :  { %v393_v30 = vunpack.c.0.s8 %v392_v17 }
 0x1f9   :  { %v238_v37 = vrot.slane %v225_v32, %v2801_v33  ;;  %v232_v38 = vrot.slane %v218_v34, %v2796_v27  ;;  %v233_v55 = vcombine.high %v225_v32, %v225_v32  ;;  %v423_v32 = vunpack.c.l.s4 %v2669_v31 }
 0x1fa   :  { %182 = vbcast.lane.b32.xlu0 %v180_v19, 256  ;;  %362 = vrot.lane.b32.xlu1 %v2772_v9, %s2663_s0 }
 0x1fb   :  { %v242_v45 = vrot.slane %v232_v38, %v2801_v33  ;;  %v246_v63 = vrot.slane %v233_v55, %v2801_v33  ;;  %v234_v8 = vcombine.high %v232_v38, %v232_v38 }
 0x1fe   :  { %186 = vbcast.lane.b32.xlu0 %v180_v19, 264  ;;  %366 = vrot.lane.b32.xlu1 %v2772_v9, %s2664_s22 }
 0x202   :  { %193 = vbcast.lane.b32.xlu0 %v191_v21, 256 }
 0x206   :  { %197 = vbcast.lane.b32.xlu0 %v191_v21, 264 }
 0x20a   :  { %204 = vbcast.lane.b32.xlu0 %v202_v23, 256 }
 0x20e   :  { %208 = vbcast.lane.b32.xlu0 %v202_v23, 264  ;;  %v250_v23 = vrot.slane %v234_v8, %v2801_v33 }
 0x212   :  { %364 = vrot.lane.b32.xlu0 %v2772_v9, %s2665_s23 }
 0x268   :  { %v176_v39 = vpop.permute.xlu1 %175  ;;  %v172_v40 = vpop.permute.xlu0 %171 }
 0x269   :  { %v256_v41 = vadd.f32 %v238_v37, %v176_v39  ;;  %v255_v42 = vadd.f32 %v238_v37, %v172_v40  ;;  %v2840_v37 = vpack.i.b16 %v2670_v36, %v2670_v36 }
 0x26b   :  { %v264_v43 = vmul.f32 0.2, %v256_v41  ;;  %v263_v44 = vmul.f32 0.2, %v255_v42 }
 0x26c   :  { %v183_v46 = vpop.permute.xlu0 %182  ;;  %v363_v19 = vpop.permute.xlu1 %362 }
 0x26d   :  { %v272_v49 = vmax.f32 %v256_v41, %v264_v43  ;;  %v271_v50 = vmax.f32 %v255_v42, %v263_v44  ;;  %v257_v51 = vadd.f32 %v242_v45, %v183_v46  ;;  %v370_v38 = vpack.i.b16 %v363_v19, %v2772_v9 }
 0x26e   :  { %v373_v39 = vshrl.u32 %v363_v19, 16  ;;  %v424_v46 = vunpack.c.0.s8 %v423_v32 }
 0x26f   :  { %v265_v53 = vmul.f32 0.2, %v257_v51  ;;  %v2811_v54 = vadd.f32 %v272_v49, %v2806_v48  ;;  %v2814_v57 = vadd.f32 %v271_v50, %v2808_v52 }
 0x270   :  { %v187_v56 = vpop.permute.xlu0 %186  ;;  %v367_v41 = vpop.permute.xlu1 %366 }
 0x271   :  { %v273_v58 = vmax.f32 %v257_v51, %v265_v53  ;;  %v258_v59 = vadd.f32 %v242_v45, %v187_v56  ;;  %v291_v60 = vsel %vm287_vm5, %v2811_v54, -inf  ;;  %v288_v61 = vsel %vm287_vm5, %v2814_v57, -inf }
 0x272   :  { %292 = vmax.xlane.f32.xlu1 %v291_v60  ;;  %289 = vmax.xlane.f32.xlu0 %v288_v61  ;;  %v2846_v45 = vsub.s32 %v393_v30, %v2775_v14  ;;  %v374_v51 = vpack.i.b16 %v373_v39, %v372_v47  ;;  %v390_v53 = vcombine.high %v370_v38, %v2840_v37  ;;  %v381_v55 = vshrl.u32 %v367_v41, 16 }
 0x273   :  { %v266_v62 = vmul.f32 0.2, %v258_v59  ;;  %v2822_v1 = vadd.f32 %v273_v58, %v2808_v52 }
 0x274   :  { %v194_v2 = vpop.permute.xlu0 %193  ;;  %v397_v9 = vrot.slane %v370_v38, %v2846_v45 }
 0x275   :  { %v274_v3 = vmax.f32 %v258_v59, %v266_v62  ;;  %v259_v4 = vadd.f32 %v246_v63, %v194_v2  ;;  %v294_v5 = vsel %vm287_vm5, %v2822_v1, -inf  ;;  %v2856_v62 = vsub.s32 %v424_v46, %v2775_v14 }
 0x276   :  { %295 = vmax.xlane.f32.xlu0 %v294_v5  ;;  %v404_v5 = vrot.slane %v390_v53, %v2846_v45 }
 0x277   :  { %v267_v6 = vmul.f32 0.2, %v259_v4  ;;  %v2827_v7 = vadd.f32 %v274_v3, %v2806_v48 }
 0x278   :  { %v198_v10 = vpop.permute.xlu0 %197 }
 0x279   :  { %v275_v11 = vmax.f32 %v259_v4, %v267_v6  ;;  %v260_v12 = vadd.f32 %v246_v63, %v198_v10  ;;  %v297_v13 = vsel %vm287_vm5, %v2827_v7, -inf  ;;  %v456_v6 = vcombine.high %v374_v51, %v2840_v37 }
 0x27a   :  { %298 = vmax.xlane.f32.xlu0 %v297_v13  ;;  %v463_v13 = vrot.slane %v374_v51, %v2846_v45 }
 0x27b   :  { %v268_v21 = vmul.f32 0.2, %v260_v12  ;;  %v2833_v24 = vadd.f32 %v275_v11, %v2808_v52 }
 0x27c   :  { %v205_v25 = vpop.permute.xlu0 %204 }
 0x27d   :  { %v276_v26 = vmax.f32 %v260_v12, %v268_v21  ;;  %v261_v28 = vadd.f32 %v250_v23, %v205_v25  ;;  %v300_v29 = vsel %vm287_vm5, %v2833_v24, -inf }
 0x27e   :  { %301 = vmax.xlane.f32.xlu1 %v300_v29 }
 0x27f   :  { %v269_v34 = vmul.f32 0.2, %v261_v28  ;;  %v2838_v35 = vadd.f32 %v276_v26, %v2806_v48  ;;  %v470_v26 = vrot.slane %v456_v6, %v2846_v45 }
 0x280   :  { %v209_v40 = vpop.permute.xlu0 %208 }
 0x281   :  { %v277_v42 = vmax.f32 %v261_v28, %v269_v34  ;;  %v262_v43 = vadd.f32 %v250_v23, %v209_v40  ;;  %v303_v44 = vsel %vm287_vm5, %v2838_v35, -inf }
 0x282   :  { %304 = vmax.xlane.f32.xlu0 %v303_v44 }
 0x283   :  { %v270_v49 = vmul.f32 0.2, %v262_v43  ;;  %v2850_v50 = vadd.f32 %v277_v42, %v2808_v52 }
 0x284   :  { %v365_v56 = vpop.permute.xlu0 %364 }
 0x285   :  { %v278_v58 = vmax.f32 %v262_v43, %v270_v49  ;;  %v378_v59 = vpack.i.b16 %v367_v41, %v365_v56  ;;  %v380_v60 = vshrl.u32 %v365_v56, 16  ;;  %v306_v61 = vsel %vm287_vm5, %v2850_v50, -inf }
 0x286   :  { %307 = vmax.xlane.f32.xlu0 %v306_v61 }
 0x287   :  { %v382_v63 = vpack.i.b16 %v381_v55, %v380_v60  ;;  %v405_v2 = vcombine.high %v378_v59, %v2840_v37  ;;  %v412_v3 = vrot.slane %v378_v59, %v2846_v45  ;;  %v2862_v4 = vadd.f32 %v278_v58, %v2806_v48 }
 0x289   :  { %v419_v8 = vrot.slane %v405_v2, %v2846_v45  ;;  %v420_v10 = vcombine.low %v397_v9, %v412_v3  ;;  %v421_v11 = vcombine.high %v397_v9, %v412_v3  ;;  %v471_v12 = vcombine.high %v382_v63, %v2840_v37 }
 0x28a   :  { %v478_v16 = vrot.slane %v382_v63, %v2846_v45  ;;  %v309_v17 = vsel %vm287_vm5, %v2862_v4, -inf }
 0x28b   :  { %v428_v19 = vrot.slane %v420_v10, %v2856_v62  ;;  %v435_v21 = vrot.slane %v421_v11, %v2856_v62  ;;  %v436_v23 = vcombine.low %v404_v5, %v419_v8  ;;  %v437_v25 = vcombine.high %v404_v5, %v419_v8  ;;  %310 = vmax.xlane.f32.xlu1 %v309_v17 }
 0x28c   :  { %v485_v28 = vrot.slane %v471_v12, %v2846_v45  ;;  %v486_v29 = vcombine.low %v463_v13, %v478_v16  ;;  %v487_v30 = vcombine.high %v463_v13, %v478_v16 }
 0x28d   :  { %v444_v31 = vrot.slane %v436_v23, %v2856_v62  ;;  %v451_v32 = vrot.slane %v437_v25, %v2856_v62  ;;  %v522_v34 = vcombine.low %v428_v19, %v435_v21  ;;  %v2351_v36 = vcombine.high %v428_v19, %v435_v21 }
 0x28e   :  { %v494_v38 = vrot.slane %v486_v29, %v2856_v62  ;;  %v501_v39 = vrot.slane %v487_v30, %v2856_v62  ;;  %v502_v40 = vcombine.low %v470_v26, %v485_v28  ;;  %v503_v41 = vcombine.high %v470_v26, %v485_v28 }
 0x28f   :  { %v529_v42 = vrot.slane %v522_v34, %v2846_v45  ;;  %v537_v43 = vrot.slane %v2351_v36, %v2846_v45  ;;  %v538_v44 = vcombine.low %v444_v31, %v451_v32  ;;  %v2352_v46 = vcombine.high %v444_v31, %v451_v32 }
 0x290   :  { %v510_v47 = vrot.slane %v502_v40, %v2856_v62  ;;  %v517_v49 = vrot.slane %v503_v41, %v2856_v62  ;;  %v572_v51 = vcombine.low %v494_v38, %v501_v39  ;;  %v2353_v53 = vcombine.high %v494_v38, %v501_v39 }
 0x291   :  { %v545_v55 = vrot.slane %v538_v44, %v2846_v45  ;;  %v553_v56 = vrot.slane %v2352_v46, %v2846_v45  ;;  %v554_v58 = vcombine.low %v529_v42, %v537_v43 }
 0x292   :  { %v579_v59 = vrot.slane %v572_v51, %v2846_v45  ;;  %v587_v60 = vrot.slane %v2353_v53, %v2846_v45  ;;  %v588_v61 = vcombine.low %v510_v47, %v517_v49  ;;  %v2354_v9 = vcombine.high %v510_v47, %v517_v49 }
 0x293   :  { %v562_v63 = vcombine.low %v545_v55, %v553_v56  ;;  %v561_v6 = vrot.slane %v554_v58, %v2856_v62 }
 0x294   :  { %v595_v2 = vrot.slane %v588_v61, %v2846_v45  ;;  %v603_v3 = vrot.slane %v2354_v9, %v2846_v45  ;;  %v604_v5 = vcombine.low %v579_v59, %v587_v60 }
 0x295   :  { %v569_v8 = vrot.slane %v562_v63, %v2856_v62 }
 0x296   :  { %v612_v10 = vcombine.low %v595_v2, %v603_v3  ;;  %v611_v13 = vrot.slane %v604_v5, %v2856_v62 }
 0x297   :  { %v570_v11 = vcombine.low %v561_v6, %v569_v8  ;;  %v571_v12 = vcombine.high %v561_v6, %v569_v8 }
 0x298   :  { %v619_v16 = vrot.slane %v612_v10, %v2856_v62 }
 0x299   :  { %v626_v21 = vshrl.u32 %v570_v11, 16  ;;  %v634_v23 = vshrl.u32 %v571_v12, 16 }
 0x29a   :  { %v620_v17 = vcombine.low %v611_v13, %v619_v16  ;;  %v621_v19 = vcombine.high %v611_v13, %v619_v16 }
 0x29c   :  { %v624_v25 = vpack.i.b16 %v620_v17, %v570_v11  ;;  %v627_v26 = vshrl.u32 %v620_v17, 16  ;;  %v632_v28 = vpack.i.b16 %v621_v19, %v571_v12  ;;  %v635_v29 = vshrl.u32 %v621_v19, 16 }
 0x29e   :  { %2425 = vmatpush3.bf16.msra.mxu1 %v624_v25  ;;  %v628_v30 = vpack.i.b16 %v627_v26, %v626_v21  ;;  %v636_v31 = vpack.i.b16 %v635_v29, %v634_v23 }
 0x29f   :  { %2436 = vmatprep.subr.bf16.mxu1 %v2660_v0 }
 0x2a0   :  { %2431 = vmatpush3.bf16.msra.mxu0 %v628_v30 }
 0x2a1   :  { %2442 = vmatprep.subr.bf16.mxu0 %v2660_v0 }
 0x2ff   :  { %v293_v32 = vpop.xlane.xlu1 %292  ;;  %v290_v34 = vpop.xlane.xlu0 %289 }
 0x300   :  { %v313_v36 = vsub.f32 %v2811_v54, %v293_v32  ;;  %v312_v38 = vsub.f32 %v2814_v57, %v290_v34 }
 0x302   :  { %v322_v39 = vmul.f32 1.442695, %v313_v36  ;;  %v320_v40 = vmul.f32 1.442695, %v312_v38 }
 0x303   :  { %v296_v41 = vpop.xlane.xlu0 %295 }
 0x304   :  { %2512 = vpow2.f32 %v322_v39  ;;  %v314_v42 = vsub.f32 %v2822_v1, %v296_v41 }
 0x305   :  { %2514 = vpow2.f32 %v320_v40 }
 0x306   :  { %v324_v43 = vmul.f32 1.442695, %v314_v42 }
 0x307   :  { %v299_v44 = vpop.xlane.xlu0 %298 }
 0x308   :  { %2516 = vpow2.f32 %v324_v43  ;;  %v315_v46 = vsub.f32 %v2827_v7, %v299_v44 }
 0x30a   :  { %v326_v47 = vmul.f32 1.442695, %v315_v46 }
 0x30b   :  { %v302_v49 = vpop.xlane.xlu1 %301 }
 0x30c   :  { %v316_v51 = vsub.f32 %v2833_v24, %v302_v49  ;;  %2518 = vpow2.f32 %v326_v47 }
 0x30e   :  { %v328_v54 = vmul.f32 1.442695, %v316_v51  ;;  %v2513_v53 = vpop.eup %2512 }
 0x30f   :  { %v305_v57 = vpop.xlane.xlu0 %304  ;;  %v2515_v55 = vpop.eup %2514  ;;  %v339_v1 = vsel %vm287_vm5, %v2513_v53, 0.0 }
 0x310   :  { %2520 = vpow2.f32 %v328_v54  ;;  %v317_v56 = vsub.f32 %v2838_v35, %v305_v57  ;;  %340 = vadd.xlane.f32.xlu1 %v339_v1  ;;  %v336_v58 = vsel %vm287_vm5, %v2515_v55, 0.0  ;;  %v638_v59 = vpack.c.bf16 %v2513_v53, %v2515_v55 }
 0x311   :  { %337 = vadd.xlane.f32.xlu0 %v336_v58 }
 0x312   :  { %v330_v60 = vmul.f32 1.442695, %v317_v56  ;;  %v2517_v7 = vpop.eup %2516  ;;  %2427 = vmatmul.mubr.msk.bf16.vlgmr.msra.gmra.mrb[0].mxu1 %vm287_vm5, %v638_v59 }
 0x313   :  { %v308_v24 = vpop.xlane.xlu0 %307  ;;  %2437 = vmatpush3.bf16.msra.mxu1 %v632_v28  ;;  %v342_v9 = vsel %vm287_vm5, %v2517_v7, 0.0  ;;  %2438 = vmatprep.mubr.msk.bf16.mxu1 %vm2661_vm0, %v2660_v0 }
 0x314   :  { %2522 = vpow2.f32 %v330_v60  ;;  %v318_v61 = vsub.f32 %v2850_v50, %v308_v24  ;;  %2448 = vmatprep.subr.bf16.mxu1 %v2660_v0 }
 0x315   :  { %343 = vadd.xlane.f32.xlu0 %v342_v9 }
 0x316   :  { %v332_v35 = vmul.f32 1.442695, %v318_v61  ;;  %v2519_v63 = vpop.eup %2518 }
 0x317   :  { %v345_v3 = vsel %vm287_vm5, %v2519_v63, 0.0  ;;  %v639_v5 = vpack.c.bf16 %v2519_v63, %v2517_v7 }
 0x318   :  { %2524 = vpow2.f32 %v332_v35  ;;  %v311_v2 = vpop.xlane.xlu1 %310  ;;  %346 = vadd.xlane.f32.xlu1 %v345_v3 }
 0x319   :  { %v319_v6 = vsub.f32 %v2862_v4, %v311_v2  ;;  %2433 = vmatmul.mubr.msk.bf16.vlgmr.msra.gmra.mrb[4].mxu0 %vm287_vm5, %v639_v5 }
 0x31a   :  { %v2521_v8 = vpop.eup %2520  ;;  %2443 = vmatpush3.bf16.msra.mxu0 %v636_v31  ;;  %2444 = vmatprep.mubr.msk.bf16.mxu0 %vm2661_vm0, %v2660_v0 }
 0x31b   :  { %v334_v50 = vmul.f32 1.442695, %v319_v6  ;;  %v348_v10 = vsel %vm287_vm5, %v2521_v8, 0.0  ;;  %2456 = vmatprep.subr.bf16.mxu0 %v2660_v0 }
 0x31c   :  { %349 = vadd.xlane.f32.xlu0 %v348_v10 }
 0x31d   :  { %2526 = vpow2.f32 %v334_v50 }
 0x31e   :  { %v2523_v11 = vpop.eup %2522 }
 0x31f   :  { %v351_v12 = vsel %vm287_vm5, %v2523_v11, 0.0  ;;  %v640_v13 = vpack.c.bf16 %v2523_v11, %v2521_v8 }
 0x320   :  { %352 = vadd.xlane.f32.xlu1 %v351_v12 }
 0x321   :  { %2439 = vmatmul.mubr.msk.bf16.vlgmr.msra.gmra.mrb[4].mxu1 %vm287_vm5, %v640_v13 }
 0x322   :  { %v2525_v4 = vpop.eup %2524  ;;  %2452 = vmatprep.mubr.msk.bf16.mxu1 %vm2661_vm0, %v2660_v0 }
 0x323   :  { %v354_v16 = vsel %vm287_vm5, %v2525_v4, 0.0 }
 0x324   :  { %355 = vadd.xlane.f32.xlu0 %v354_v16 }
 0x327   :  { %v2527_v17 = vpop.eup %2526 }
 0x328   :  { %v357_v19 = vsel %vm287_vm5, %v2527_v17, 0.0  ;;  %v641_v21 = vpack.c.bf16 %v2527_v17, %v2525_v4 }
 0x329   :  { %358 = vadd.xlane.f32.xlu1 %v357_v19 }
 0x32a   :  { %2445 = vmatmul.mubr.msk.bf16.vlgmr.msra.gmra.mrb[8].mxu0 %vm287_vm5, %v641_v21 }
 0x32b   :  { %2458 = vmatprep.mubr.msk.bf16.mxu0 %vm2661_vm0, %v2660_v0 }
 0x39d   :  { %v341_v25 = vpop.xlane.xlu1 %340 }
 0x39e   :  { %v338_v23 = vpop.xlane.xlu0 %337 }
 0x39f   :  { %2528 = vrcp.f32 %v338_v23 }
 0x3a2   :  { %v344_v26 = vpop.xlane.xlu0 %343 }
 0x3a5   :  { %v347_v28 = vpop.xlane.xlu1 %346 }
 0x3a9   :  { %v350_v30 = vpop.xlane.xlu0 %349  ;;  %v2529_v44 = vpop.eup %2528 }
 0x3aa   :  { %2530 = vrcp.f32 %v350_v30 }
 0x3ab   :  { %2532 = vrcp.f32 %v341_v25 }
 0x3ad   :  { %v353_v34 = vpop.xlane.xlu1 %352 }
 0x3ae   :  { %2534 = vrcp.f32 %v353_v34 }
 0x3af   :  { %2536 = vrcp.f32 %v344_v26 }
 0x3b1   :  { %v356_v41 = vpop.xlane.xlu0 %355 }
 0x3b2   :  { %2538 = vrcp.f32 %v356_v41 }
 0x3b3   :  { %2540 = vrcp.f32 %v347_v28 }
 0x3b4   :  { %v2531_v46 = vpop.eup %2530 }
 0x3b5   :  { %v2533_v49 = vpop.eup %2532 }
 0x3b6   :  { %v359_v43 = vpop.xlane.xlu1 %358 }
 0x3b7   :  { %2542 = vrcp.f32 %v359_v43 }
 0x3b8   :  { %v2535_v57 = vpop.eup %2534 }
 0x3b9   :  { %v2537_v61 = vpop.eup %2536 }
 0x3bc   :  { %v2539_v9 = vpop.eup %2538 }
 0x3bd   :  { %v2541_v63 = vpop.eup %2540 }
 0x3c1   :  { %v2543_v6 = vpop.eup %2542 }
 0x3e5   :  { %v679_v29 = vpop.f32.mrb[0].mxu1 }
 0x3e6   :  { %v2428_v31 = vpop.f32.mrb[1].mxu1  ;;  %v826_v51 = vmul.f32 %v2529_v44, %v679_v29 }
 0x3e7   :  { %v682_v32 = vpop.f32.mrb[2].mxu1 }
 0x3e8   :  { %v2429_v36 = vpop.f32.mrb[3].mxu1  ;;  %v827_v56 = vmul.f32 %v2533_v49, %v682_v32 }
 0x3ec   :  { %v723_v38 = vpop.f32.mrb[4].mxu0 }
 0x3ed   :  { %v2434_v39 = vpop.f32.mrb[5].mxu0  ;;  %v828_v2 = vmul.f32 %v2537_v61, %v723_v38 }
 0x3ee   :  { %v726_v40 = vpop.f32.mrb[6].mxu0 }
 0x3ef   :  { %v2435_v42 = vpop.f32.mrb[7].mxu0  ;;  %v829_v50 = vmul.f32 %v2541_v63, %v726_v40 }
 0x3f4   :  { %v767_v47 = vpop.f32.mrb[4].mxu1 }
 0x3f5   :  { %v830_v54 = vmul.f32 %v2531_v46, %v767_v47  ;;  %v2440_v53 = vpop.f32.mrb[5].mxu1 }
 0x3f6   :  { %v770_v55 = vpop.f32.mrb[6].mxu1 }
 0x3f7   :  { %v834_v1 = vcombine.low %v826_v51, %v830_v54  ;;  %v835_v58 = vcombine.high %v826_v51, %v830_v54  ;;  %v831_v59 = vmul.f32 %v2535_v57, %v770_v55  ;;  %v2441_v60 = vpop.f32.mrb[7].mxu1 }
 0x3f9   :  { %v902_v7 = vcombine.low %v827_v56, %v831_v59  ;;  %v903_v24 = vcombine.high %v827_v56, %v831_v59  ;;  %v842_v4 = vrot.slane %v834_v1, %v2846_v45  ;;  %v849_v16 = vrot.slane %v835_v58, %v2846_v45 }
 0x3fb   :  { %v910_v30 = vrot.slane %v902_v7, %v2846_v45  ;;  %v917_v31 = vrot.slane %v903_v24, %v2846_v45 }
 0x3fd   :  { %v811_v35 = vpop.f32.mrb[8].mxu0 }
 0x3fe   :  { %v832_v3 = vmul.f32 %v2539_v9, %v811_v35  ;;  %v2446_v5 = vpop.f32.mrb[9].mxu0 }
 0x3ff   :  { %v814_v8 = vpop.f32.mrb[10].mxu0 }
 0x400   :  { %v850_v10 = vcombine.low %v828_v2, %v832_v3  ;;  %v851_v11 = vcombine.high %v828_v2, %v832_v3  ;;  %v833_v12 = vmul.f32 %v2543_v6, %v814_v8  ;;  %v2447_v13 = vpop.f32.mrb[11].mxu0 }
 0x402   :  { %v858_v17 = vrot.slane %v850_v10, %v2846_v45  ;;  %v865_v19 = vrot.slane %v851_v11, %v2846_v45  ;;  %v918_v21 = vcombine.low %v829_v50, %v833_v12  ;;  %v919_v23 = vcombine.high %v829_v50, %v833_v12 }
 0x404   :  { %v866_v25 = vcombine.low %v842_v4, %v858_v17  ;;  %v867_v26 = vcombine.high %v842_v4, %v858_v17  ;;  %v882_v28 = vcombine.low %v849_v16, %v865_v19  ;;  %v883_v29 = vcombine.high %v849_v16, %v865_v19 }
 0x405   :  { %v926_v32 = vrot.slane %v918_v21, %v2846_v45  ;;  %v933_v34 = vrot.slane %v919_v23, %v2846_v45 }
 0x406   :  { %v874_v36 = vrot.slane %v866_v25, %v2856_v62  ;;  %v881_v38 = vrot.slane %v867_v26, %v2856_v62  ;;  %v890_v39 = vrot.slane %v882_v28, %v2856_v62  ;;  %v897_v40 = vrot.slane %v883_v29, %v2856_v62 }
 0x407   :  { %v934_v41 = vcombine.low %v910_v30, %v926_v32  ;;  %v935_v42 = vcombine.high %v910_v30, %v926_v32  ;;  %v950_v43 = vcombine.low %v917_v31, %v933_v34  ;;  %v951_v44 = vcombine.high %v917_v31, %v933_v34 }
 0x408   :  { %v970_v46 = vcombine.low %v874_v36, %v881_v38  ;;  %v2359_v47 = vcombine.high %v874_v36, %v881_v38  ;;  %v986_v49 = vcombine.low %v890_v39, %v897_v40  ;;  %v2360_v51 = vcombine.high %v890_v39, %v897_v40  ;;  %v2508_v38 = vld [vmem:[%s3194_s5] sm:$0xff]   ;;  %v2509_v39 = vld [vmem:[%s3194_s5 + $0x8] sm:$0xff]  }
 0x409   :  { %v942_v54 = vrot.slane %v934_v41, %v2856_v62  ;;  %v949_v53 = vrot.slane %v935_v42, %v2856_v62  ;;  %v958_v57 = vrot.slane %v950_v43, %v2856_v62  ;;  %v965_v55 = vrot.slane %v951_v44, %v2856_v62  ;;  %2449 = vmatpush3.bf16.msra.mxu1 %v2508_v38 }
 0x40a   :  { %v977_v56 = vrot.slane %v970_v46, %v2846_v45  ;;  %v985_v1 = vrot.slane %v2359_v47, %v2846_v45  ;;  %v993_v58 = vrot.slane %v986_v49, %v2846_v45  ;;  %v1001_v59 = vrot.slane %v2360_v51, %v2846_v45  ;;  %2450 = vmatprep.subr.bf16.mxu1 %v2660_v0  ;;  %v2363_v47 = vld [vmem:[%s3192_s3] ss:$0 sm:$0xff] }
 0x40b   :  { %v1038_v60 = vcombine.low %v942_v54, %v949_v53  ;;  %v2361_v7 = vcombine.high %v942_v54, %v949_v53  ;;  %v1054_v24 = vcombine.low %v958_v57, %v965_v55  ;;  %v2362_v61 = vcombine.high %v958_v57, %v965_v55  ;;  %v2364_v57 = vld [vmem:[%s3193_s4] ss:$0 sm:$0xff] }
 0x40c   :  { %v1003_v9 = vcombine.high %v977_v56, %v985_v1  ;;  %v1019_v35 = vcombine.high %v993_v58, %v1001_v59  ;;  %v1002_v63 = vcombine.low %v977_v56, %v985_v1  ;;  %v1018_v2 = vcombine.low %v993_v58, %v1001_v59 }
 0x40d   :  { %v1045_v3 = vrot.slane %v1038_v60, %v2846_v45  ;;  %v1053_v5 = vrot.slane %v2361_v7, %v2846_v45  ;;  %v1061_v6 = vrot.slane %v1054_v24, %v2846_v45  ;;  %v1069_v8 = vrot.slane %v2362_v61, %v2846_v45  ;;  %2451 = vmatpush3.bf16.msra.mxu1 %v2509_v39 }
 0x40e   :  { %v1017_v50 = vrot.slane %v1003_v9, %v2856_v62  ;;  %v1033_v10 = vrot.slane %v1019_v35, %v2856_v62  ;;  %v1010_v11 = vrot.slane %v1002_v63, %v2856_v62  ;;  %v1026_v12 = vrot.slane %v1018_v2, %v2856_v62  ;;  %2462 = vmatprep.subr.bf16.mxu1 %v2660_v0 }
 0x40f   :  { %v1070_v13 = vcombine.low %v1045_v3, %v1053_v5  ;;  %v1086_v4 = vcombine.low %v1061_v6, %v1069_v8  ;;  %v1071_v16 = vcombine.high %v1045_v3, %v1053_v5  ;;  %v1087_v17 = vcombine.high %v1061_v6, %v1069_v8 }
 0x410   :  { %v1036_v19 = vcombine.low %v1017_v50, %v1033_v10  ;;  %v1035_v21 = vcombine.high %v1010_v11, %v1026_v12  ;;  %v1037_v23 = vcombine.high %v1017_v50, %v1033_v10  ;;  %v1034_v25 = vcombine.low %v1010_v11, %v1026_v12 }
 0x411   :  { %v1078_v26 = vrot.slane %v1070_v13, %v2856_v62  ;;  %v1094_v28 = vrot.slane %v1086_v4, %v2856_v62  ;;  %v1085_v29 = vrot.slane %v1071_v16, %v2856_v62  ;;  %v1101_v30 = vrot.slane %v1087_v17, %v2856_v62 }
 0x412   :  { %1116 = vrot.lane.b32.xlu1 %v1036_v19, %s2671_s24  ;;  %1108 = vrot.lane.b32.xlu0 %v1035_v21, %s2672_s25 }
 0x413   :  { %v1103_v31 = vcombine.high %v1078_v26, %v1094_v28  ;;  %v1104_v32 = vcombine.low %v1085_v29, %v1101_v30  ;;  %v1105_v34 = vcombine.high %v1085_v29, %v1101_v30  ;;  %v1102_v36 = vcombine.low %v1078_v26, %v1094_v28 }
 0x416   :  { %1110 = vrot.lane.b32.xlu1 %v1103_v31, %s2672_s25  ;;  %1118 = vrot.lane.b32.xlu0 %v1104_v32, %s2671_s24 }
 0x41a   :  { %1124 = vrot.lane.b32.xlu1 %v1037_v23, %s2673_s26  ;;  %1126 = vrot.lane.b32.xlu0 %v1105_v34, %s2673_s26 }
 0x484   :  { %v1117_v40 = vpop.permute.xlu1 %1116  ;;  %v1109_v41 = vpop.permute.xlu0 %1108 }
 0x485   :  { %v1130_v44 = vsel %vm77_vm2, %v1034_v25, %v1109_v41 }
 0x486   :  { %v1132_v54 = vsel %vm287_vm5, %v1130_v44, %v1117_v40 }
 0x488   :  { %v1111_v42 = vpop.permute.xlu1 %1110  ;;  %v1119_v43 = vpop.permute.xlu0 %1118 }
 0x489   :  { %v1131_v46 = vsel %vm77_vm2, %v1102_v36, %v1111_v42 }
 0x48a   :  { %v1133_v49 = vsel %vm287_vm5, %v1131_v46, %v1119_v43 }
 0x48c   :  { %v1125_v51 = vpop.permute.xlu1 %1124  ;;  %v1127_v53 = vpop.permute.xlu0 %1126 }
 0x48d   :  { %v1135_v55 = vsel %vm1134_vm6, %v1132_v54, %v1125_v51  ;;  %v1136_v56 = vsel %vm1134_vm6, %v1133_v49, %v1127_v53 }
 0x48e   :  { %v1144_v1 = vmul.f32 %v2363_v47, %v1135_v55  ;;  %v1145_v58 = vmul.f32 %v2363_v47, %v1136_v56 }
 0x490   :  { %v1153_v59 = vadd.f32 %v2364_v57, %v1144_v1  ;;  %v1154_v60 = vadd.f32 %v2364_v57, %v1145_v58 }
 0x492   :  { %v1157_v7 = vmin.f32 %v1153_v59, 0.0  ;;  %v1158_v24 = vmin.f32 %v1154_v60, 0.0  ;;  %vm1155_vm7 = vcmp.gt.f32.partialorder %v1153_v59, 0.0  ;;  %vm1156_vm8 = vcmp.gt.f32.partialorder %v1154_v60, 0.0 }
 0x494   :  { %v1159_v61 = vmul.f32 1.442695, %v1157_v7  ;;  %v1161_v9 = vmul.f32 1.442695, %v1158_v24 }
 0x496   :  { %2544 = vpow2.f32 %v1159_v61 }
 0x497   :  { %2546 = vpow2.f32 %v1161_v9 }
 0x4a0   :  { %v2545_v35 = vpop.eup %2544 }
 0x4a1   :  { %v2547_v63 = vpop.eup %2546  ;;  %v2365_v2 = vadd.f32 -1.0, %v2545_v35 }
 0x4a2   :  { %v2366_v3 = vadd.f32 -1.0, %v2547_v63 }
 0x4a3   :  { %v1165_v5 = vsel %vm1155_vm7, %v1153_v59, %v2365_v2 }
 0x4a4   :  { %v1166_v6 = vsel %vm1156_vm8, %v1154_v60, %v2366_v3 }
 0x4a5   :  { %v1167_v8 = vpack.c.bf16 %v1166_v6, %v1165_v5 }
 0x4a7   :  { %2453 = vmatmul.mubr.msk.bf16.vlgmr.msra.gmra.mrb[8].mxu1 %vm1184_vm9, %v1167_v8 }
 0x4a8   :  { %2464 = vmatprep.mubr.msk.bf16.mxu1 %vm2661_vm0, %v2660_v0 }
 0x57a   :  { %v1222_v50 = vpop.f32.mrb[8].mxu1 }
 0x57b   :  { %1231 = vrot.lane.b32.xlu1 %v1222_v50, %s2662_s21  ;;  %v2454_v10 = vpop.f32.mrb[9].mxu1 }
 0x57c   :  { %v1225_v11 = vpop.f32.mrb[10].mxu1 }
 0x57d   :  { %v2988_v12 = vpack.c.bf16 %v1225_v11, %v1222_v50  ;;  %1233 = vrot.lane.b32.xlu0 %v1225_v11, %s2662_s21  ;;  %v2455_v13 = vpop.f32.mrb[11].mxu1 }
 0x581   :  { %1464 = vrot.lane.b32.xlu0 %v2988_v12, %s2663_s0 }
 0x5ed   :  { %v1232_v4 = vpop.permute.xlu1 %1231 }
 0x5ee   :  { %1237 = vxpose.xlu1.b32.start [1/2] (short) (narrow) %v1232_v4, 8 }
 0x5ef   :  { %v1234_v16 = vpop.permute.xlu0 %1233 }
 0x5f2   :  { %1238 = vxpose.xlu1.b32.end [2/2] (short) (narrow) %v1234_v16, 8 }
 0x5f3   :  { %v3003_v28 = vpop.permute.xlu0 %1464 }
 0x66e   :  { %v1253_v17 = vpop.trf.xlu1 }
 0x66f   :  { %v1272_v19 = vrot.slane %v1253_v17, %v168_v15  ;;  %v1283_v21 = vrot.slane %v1253_v17, %v179_v18  ;;  %v1294_v23 = vrot.slane %v1253_v17, %v190_v20  ;;  %v1305_v25 = vrot.slane %v1253_v17, %v201_v22 }
 0x670   :  { %v1320_v26 = vrot.slane %v1253_v17, %v2796_v27 }
 0x671   :  { %1274 = vbcast.lane.b32.xlu0 %v1272_v19, 256 }
 0x672   :  { %v1328_v15 = vrot.slane %v1320_v26, %v2796_v27  ;;  %v1321_v42 = vcombine.high %v1320_v26, %v1320_v26 }
 0x674   :  { %v1341_v18 = vrot.slane %v1328_v15, %v2801_v33  ;;  %v1335_v44 = vrot.slane %v1321_v42, %v2796_v27  ;;  %v1336_v49 = vcombine.high %v1328_v15, %v1328_v15 }
 0x675   :  { %1278 = vbcast.lane.b32.xlu0 %v1272_v19, 264 }
 0x676   :  { %v1345_v47 = vrot.slane %v1335_v44, %v2801_v33  ;;  %v1349_v53 = vrot.slane %v1336_v49, %v2801_v33  ;;  %v1337_v1 = vcombine.high %v1335_v44, %v1335_v44 }
 0x678   :  { %v1353_v61 = vrot.slane %v1337_v1, %v2801_v33 }
 0x679   :  { %1285 = vbcast.lane.b32.xlu0 %v1283_v21, 256 }
 0x67d   :  { %1289 = vbcast.lane.b32.xlu0 %v1283_v21, 264 }
 0x681   :  { %1296 = vbcast.lane.b32.xlu0 %v1294_v23, 256 }
 0x685   :  { %1300 = vbcast.lane.b32.xlu0 %v1294_v23, 264 }
 0x689   :  { %1307 = vbcast.lane.b32.xlu0 %v1305_v25, 256 }
 0x68d   :  { %1311 = vbcast.lane.b32.xlu0 %v1305_v25, 264 }
 0x6e3   :  { %v1275_v29 = vpop.permute.xlu0 %1274 }
 0x6e4   :  { %v1358_v30 = vadd.f32 %v1341_v18, %v1275_v29 }
 0x6e6   :  { %v1366_v31 = vmul.f32 0.2, %v1358_v30 }
 0x6e7   :  { %v1279_v32 = vpop.permute.xlu0 %1278 }
 0x6e8   :  { %v1374_v20 = vmax.f32 %v1358_v30, %v1366_v31  ;;  %v1359_v34 = vadd.f32 %v1341_v18, %v1279_v32  ;;  %v1475_v30 = vshrl.u32 %v3003_v28, 16  ;;  %v1474_v32 = vshrl.u32 %v2988_v12, 16 }
 0x6ea   :  { %v1367_v36 = vmul.f32 0.2, %v1359_v34  ;;  %v1382_v14 = vadd.f32 %v1374_v20, %v2808_v52 }
 0x6eb   :  { %v1286_v41 = vpop.permute.xlu0 %1285 }
 0x6ec   :  { %v1375_v22 = vmax.f32 %v1359_v34, %v1367_v36  ;;  %v1390_v38 = vsel %vm287_vm5, %v1382_v14, -inf  ;;  %v1360_v51 = vadd.f32 %v1345_v47, %v1286_v41  ;;  %v1476_v34 = vpack.i.b16 %v1475_v30, %v1474_v32 }
 0x6ed   :  { %1391 = vmax.xlane.f32.xlu0 %v1390_v38 }
 0x6ee   :  { %v3009_v39 = vadd.f32 %v1375_v22, %v2806_v48  ;;  %v1368_v57 = vmul.f32 0.2, %v1360_v51 }
 0x6ef   :  { %v1290_v43 = vpop.permute.xlu0 %1289 }
 0x6f0   :  { %v1393_v40 = vsel %vm287_vm5, %v3009_v39, -inf  ;;  %v1361_v55 = vadd.f32 %v1345_v47, %v1290_v43  ;;  %v1376_v58 = vmax.f32 %v1360_v51, %v1368_v57  ;;  %v1552_v43 = vcombine.high %v1476_v34, %v2840_v37 }
 0x6f1   :  { %1394 = vmax.xlane.f32.xlu1 %v1393_v40 }
 0x6f2   :  { %v1369_v59 = vmul.f32 0.2, %v1361_v55  ;;  %v3022_v9 = vadd.f32 %v1376_v58, %v2808_v52  ;;  %v1566_v57 = vrot.slane %v1552_v43, %v2846_v45 }
 0x6f3   :  { %v1297_v46 = vpop.permute.xlu0 %1296 }
 0x6f4   :  { %v1362_v7 = vadd.f32 %v1349_v53, %v1297_v46  ;;  %v1377_v27 = vmax.f32 %v1361_v55, %v1369_v59  ;;  %v1396_v5 = vsel %vm287_vm5, %v3022_v9, -inf }
 0x6f6   :  { %v1370_v35 = vmul.f32 0.2, %v1362_v7  ;;  %v3027_v6 = vadd.f32 %v1377_v27, %v2806_v48 }
 0x6f7   :  { %v1301_v54 = vpop.permute.xlu0 %1300 }
 0x6f8   :  { %v1363_v56 = vadd.f32 %v1349_v53, %v1301_v54  ;;  %v1378_v8 = vmax.f32 %v1362_v7, %v1370_v35  ;;  %v1399_v33 = vsel %vm287_vm5, %v3027_v6, -inf  ;;  %v1559_v53 = vrot.slane %v1476_v34, %v2846_v45 }
 0x6fa   :  { %v1371_v24 = vmul.f32 0.2, %v1363_v56  ;;  %v3037_v17 = vadd.f32 %v1378_v8, %v2808_v52 }
 0x6fb   :  { %v1308_v60 = vpop.permute.xlu0 %1307 }
 0x6fc   :  { %v1379_v63 = vmax.f32 %v1363_v56, %v1371_v24  ;;  %v1364_v2 = vadd.f32 %v1353_v61, %v1308_v60  ;;  %v1402_v21 = vsel %vm287_vm5, %v3037_v17, -inf }
 0x6fe   :  { %v1372_v50 = vmul.f32 0.2, %v1364_v2  ;;  %v3030_v11 = vadd.f32 %v1379_v63, %v2806_v48 }
 0x6ff   :  { %v1312_v3 = vpop.permute.xlu0 %1311 }
 0x700   :  { %v1365_v10 = vadd.f32 %v1353_v61, %v1312_v3  ;;  %v1380_v13 = vmax.f32 %v1364_v2, %v1372_v50  ;;  %v1405_v16 = vsel %vm287_vm5, %v3030_v11, -inf }
 0x702   :  { %1466 = vrot.lane.b32.xlu1 %v2988_v12, %s2665_s23  ;;  %v1373_v4 = vmul.f32 0.2, %v1365_v10  ;;  %v3042_v23 = vadd.f32 %v1380_v13, %v2808_v52  ;;  %v1472_v52 = vpack.i.b16 %v3003_v28, %v2988_v12 }
 0x703   :  { %1468 = vrot.lane.b32.xlu0 %v2988_v12, %s2664_s22 }
 0x704   :  { %v1381_v19 = vmax.f32 %v1365_v10, %v1373_v4  ;;  %v1408_v25 = vsel %vm287_vm5, %v3042_v23, -inf  ;;  %v1486_v38 = vcombine.high %v1472_v52, %v2840_v37  ;;  %v1493_v28 = vrot.slane %v1472_v52, %v2846_v45 }
 0x706   :  { %v3047_v26 = vadd.f32 %v1381_v19, %v2806_v48 }
 0x708   :  { %v1411_v15 = vsel %vm287_vm5, %v3047_v26, -inf }
 0x722   :  { %1397 = vmax.xlane.f32.xlu0 %v1396_v5 }
 0x726   :  { %1400 = vmax.xlane.f32.xlu0 %v1399_v33  ;;  %1406 = vmax.xlane.f32.xlu1 %v1405_v16 }
 0x72a   :  { %1403 = vmax.xlane.f32.xlu0 %v1402_v21 }
 0x72e   :  { %1409 = vmax.xlane.f32.xlu0 %v1408_v25 }
 0x732   :  { %1412 = vmax.xlane.f32.xlu0 %v1411_v15 }
 0x77a   :  { %v1392_v18 = vpop.xlane.xlu0 %1391 }
 0x77b   :  { %v1414_v29 = vsub.f32 %v1382_v14, %v1392_v18 }
 0x77d   :  { %v1422_v31 = vmul.f32 1.442695, %v1414_v29 }
 0x77e   :  { %v1395_v20 = vpop.xlane.xlu1 %1394  ;;  %v1469_v36 = vpop.permute.xlu0 %1468 }
 0x77f   :  { %2548 = vpow2.f32 %v1422_v31  ;;  %v1415_v48 = vsub.f32 %v3009_v39, %v1395_v20  ;;  %v1483_v14 = vshrl.u32 %v1469_v36, 16  ;;  %v1500_v39 = vrot.slane %v1486_v38, %v2846_v45 }
 0x781   :  { %v1424_v22 = vmul.f32 1.442695, %v1415_v48 }
 0x782   :  { %v1467_v40 = vpop.permute.xlu1 %1466 }
 0x783   :  { %2550 = vpow2.f32 %v1424_v22  ;;  %v1480_v41 = vpack.i.b16 %v1469_v36, %v1467_v40  ;;  %v1482_v42 = vshrl.u32 %v1467_v40, 16 }
 0x785   :  { %v1484_v44 = vpack.i.b16 %v1483_v14, %v1482_v42  ;;  %v1501_v12 = vcombine.high %v1480_v41, %v2840_v37  ;;  %v1508_v46 = vrot.slane %v1480_v41, %v2846_v45 }
 0x787   :  { %v1515_v47 = vrot.slane %v1501_v12, %v2846_v45  ;;  %v1516_v49 = vcombine.low %v1493_v28, %v1508_v46  ;;  %v1517_v51 = vcombine.high %v1493_v28, %v1508_v46  ;;  %v1567_v54 = vcombine.high %v1484_v44, %v2840_v37 }
 0x788   :  { %v1574_v55 = vrot.slane %v1484_v44, %v2846_v45 }
 0x789   :  { %v2549_v56 = vpop.eup %2548  ;;  %v1524_v1 = vrot.slane %v1516_v49, %v2856_v62  ;;  %v1531_v58 = vrot.slane %v1517_v51, %v2856_v62  ;;  %v1532_v59 = vcombine.low %v1500_v39, %v1515_v47  ;;  %v1533_v60 = vcombine.high %v1500_v39, %v1515_v47 }
 0x78a   :  { %v1581_v7 = vrot.slane %v1567_v54, %v2846_v45  ;;  %v1582_v24 = vcombine.low %v1559_v53, %v1574_v55  ;;  %v1583_v61 = vcombine.high %v1559_v53, %v1574_v55  ;;  %v1438_v27 = vsel %vm287_vm5, %v2549_v56, 0.0 }
 0x78b   :  { %v1540_v37 = vrot.slane %v1532_v59, %v2856_v62  ;;  %v1547_v35 = vrot.slane %v1533_v60, %v2856_v62  ;;  %v1618_v63 = vcombine.low %v1524_v1, %v1531_v58  ;;  %v2370_v2 = vcombine.high %v1524_v1, %v1531_v58  ;;  %1439 = vadd.xlane.f32.xlu1 %v1438_v27 }
 0x78c   :  { %v1590_v3 = vrot.slane %v1582_v24, %v2856_v62  ;;  %v1597_v5 = vrot.slane %v1583_v61, %v2856_v62  ;;  %v1598_v8 = vcombine.low %v1566_v57, %v1581_v7  ;;  %v1599_v50 = vcombine.high %v1566_v57, %v1581_v7 }
 0x78d   :  { %v2551_v10 = vpop.eup %2550  ;;  %v1625_v33 = vrot.slane %v1618_v63, %v2846_v45  ;;  %v1633_v13 = vrot.slane %v2370_v2, %v2846_v45  ;;  %v1634_v4 = vcombine.low %v1540_v37, %v1547_v35  ;;  %v2371_v16 = vcombine.high %v1540_v37, %v1547_v35 }
 0x78e   :  { %v1606_v19 = vrot.slane %v1598_v8, %v2856_v62  ;;  %v1613_v21 = vrot.slane %v1599_v50, %v2856_v62  ;;  %v1668_v25 = vcombine.low %v1590_v3, %v1597_v5  ;;  %v2372_v15 = vcombine.high %v1590_v3, %v1597_v5 }
 0x78f   :  { %v1641_v18 = vrot.slane %v1634_v4, %v2846_v45  ;;  %v1649_v29 = vrot.slane %v2371_v16, %v2846_v45  ;;  %v1441_v30 = vsel %vm287_vm5, %v2551_v10, 0.0  ;;  %v1650_v31 = vcombine.low %v1625_v33, %v1633_v13 }
 0x790   :  { %v1675_v52 = vrot.slane %v1668_v25, %v2846_v45  ;;  %v1683_v32 = vrot.slane %v2372_v15, %v2846_v45  ;;  %v1684_v20 = vcombine.low %v1606_v19, %v1613_v21  ;;  %v2373_v48 = vcombine.high %v1606_v19, %v1613_v21  ;;  %1442 = vadd.xlane.f32.xlu0 %v1441_v30 }
 0x791   :  { %v1658_v34 = vcombine.low %v1641_v18, %v1649_v29  ;;  %v1657_v14 = vrot.slane %v1650_v31, %v2856_v62  ;;  %v1734_v54 = vpack.c.bf16 %v2551_v10, %v2549_v56 }
 0x792   :  { %v1691_v36 = vrot.slane %v1684_v20, %v2846_v45  ;;  %v1699_v22 = vrot.slane %v2373_v48, %v2846_v45  ;;  %v1700_v38 = vcombine.low %v1675_v52, %v1683_v32 }
 0x793   :  { %v1665_v40 = vrot.slane %v1658_v34, %v2856_v62 }
 0x794   :  { %v1708_v41 = vcombine.low %v1691_v36, %v1699_v22  ;;  %v1707_v43 = vrot.slane %v1700_v38, %v2856_v62 }
 0x795   :  { %v1666_v42 = vcombine.low %v1657_v14, %v1665_v40  ;;  %v1667_v51 = vcombine.high %v1657_v14, %v1665_v40 }
 0x796   :  { %v1715_v28 = vrot.slane %v1708_v41, %v2856_v62 }
 0x797   :  { %v1722_v46 = vshrl.u32 %v1666_v42, 16 }
 0x798   :  { %v1716_v44 = vcombine.low %v1707_v43, %v1715_v28  ;;  %v1717_v47 = vcombine.high %v1707_v43, %v1715_v28 }
 0x79a   :  { %v1720_v12 = vpack.i.b16 %v1716_v44, %v1666_v42  ;;  %v1723_v39 = vshrl.u32 %v1716_v44, 16  ;;  %v1728_v53 = vpack.i.b16 %v1717_v47, %v1667_v51 }
 0x79c   :  { %2457 = vmatpush3.bf16.msra.mxu0 %v1720_v12  ;;  %v1724_v49 = vpack.i.b16 %v1723_v39, %v1722_v46 }
 0x79d   :  { %2468 = vmatprep.subr.bf16.mxu0 %v2660_v0 }
 0x79e   :  { %2463 = vmatpush3.bf16.msra.mxu1 %v1724_v49 }
 0x79f   :  { %2459 = vmatmul.mubr.msk.bf16.vlgmr.msra.gmra.mrb[12].mxu0 %vm287_vm5, %v1734_v54  ;;  %2474 = vmatprep.subr.bf16.mxu1 %v2660_v0 }
 0x7a0   :  { %2469 = vmatpush3.bf16.msra.mxu0 %v1728_v53  ;;  %2470 = vmatprep.mubr.msk.bf16.mxu0 %vm2661_vm0, %v2660_v0 }
 0x7a1   :  { %2480 = vmatprep.subr.bf16.mxu0 %v2660_v0 }
 0x7af   :  { %v1398_v57 = vpop.xlane.xlu0 %1397 }
 0x7b0   :  { %v1416_v55 = vsub.f32 %v3022_v9, %v1398_v57 }
 0x7b2   :  { %v1426_v1 = vmul.f32 1.442695, %v1416_v55 }
 0x7b3   :  { %v1407_v58 = vpop.xlane.xlu1 %1406  ;;  %v1401_v56 = vpop.xlane.xlu0 %1400 }
 0x7b4   :  { %2552 = vpow2.f32 %v1426_v1  ;;  %v1419_v59 = vsub.f32 %v3030_v11, %v1407_v58  ;;  %v1417_v60 = vsub.f32 %v3027_v6, %v1401_v56  ;;  %v1731_v11 = vshrl.u32 %v1717_v47, 16 }
 0x7b6   :  { %v1428_v7 = vmul.f32 1.442695, %v1417_v60  ;;  %v1432_v24 = vmul.f32 1.442695, %v1419_v59 }
 0x7b7   :  { %v1404_v61 = vpop.xlane.xlu0 %1403 }
 0x7b8   :  { %v1418_v27 = vsub.f32 %v3037_v17, %v1404_v61  ;;  %2554 = vpow2.f32 %v1428_v7  ;;  %v1730_v17 = vshrl.u32 %v1667_v51, 16 }
 0x7b9   :  { %2556 = vpow2.f32 %v1432_v24 }
 0x7ba   :  { %v1430_v37 = vmul.f32 1.442695, %v1418_v27 }
 0x7bb   :  { %v1410_v35 = vpop.xlane.xlu0 %1409 }
 0x7bc   :  { %2558 = vpow2.f32 %v1430_v37  ;;  %v1420_v9 = vsub.f32 %v3042_v23, %v1410_v35  ;;  %v1732_v23 = vpack.i.b16 %v1731_v11, %v1730_v17 }
 0x7be   :  { %v2553_v63 = vpop.eup %2552  ;;  %v1434_v2 = vmul.f32 1.442695, %v1420_v9 }
 0x7bf   :  { %v1413_v3 = vpop.xlane.xlu0 %1412  ;;  %v1444_v5 = vsel %vm287_vm5, %v2553_v63, 0.0 }
 0x7c0   :  { %2560 = vpow2.f32 %v1434_v2  ;;  %v1421_v6 = vsub.f32 %v3047_v26, %v1413_v3  ;;  %1445 = vadd.xlane.f32.xlu1 %v1444_v5 }
 0x7c2   :  { %v1436_v8 = vmul.f32 1.442695, %v1421_v6  ;;  %v2555_v50 = vpop.eup %2554 }
 0x7c3   :  { %v1447_v10 = vsel %vm287_vm5, %v2555_v50, 0.0  ;;  %v1735_v33 = vpack.c.bf16 %v2555_v50, %v2553_v63  ;;  %v2557_v13 = vpop.eup %2556 }
 0x7c4   :  { %2562 = vpow2.f32 %v1436_v8  ;;  %1448 = vadd.xlane.f32.xlu0 %v1447_v10  ;;  %v1453_v26 = vsel %vm287_vm5, %v2557_v13, 0.0 }
 0x7c5   :  { %2465 = vmatmul.mubr.msk.bf16.vlgmr.msra.gmra.mrb[12].mxu1 %vm287_vm5, %v1735_v33 }
 0x7c6   :  { %v2559_v4 = vpop.eup %2558  ;;  %2475 = vmatpush3.bf16.msra.mxu1 %v1732_v23  ;;  %2476 = vmatprep.mubr.msk.bf16.mxu1 %vm2661_vm0, %v2660_v0 }
 0x7c7   :  { %v1450_v16 = vsel %vm287_vm5, %v2559_v4, 0.0  ;;  %v1736_v19 = vpack.c.bf16 %v2557_v13, %v2559_v4 }
 0x7c8   :  { %1451 = vadd.xlane.f32.xlu1 %v1450_v16  ;;  %1454 = vadd.xlane.f32.xlu0 %v1453_v26 }
 0x7c9   :  { %2471 = vmatmul.mubr.msk.bf16.vlgmr.msra.gmra.mrb[16].mxu0 %vm287_vm5, %v1736_v19 }
 0x7ca   :  { %v2561_v21 = vpop.eup %2560  ;;  %2484 = vmatprep.mubr.msk.bf16.mxu0 %vm2661_vm0, %v2660_v0 }
 0x7cb   :  { %v1456_v25 = vsel %vm287_vm5, %v2561_v21, 0.0 }
 0x7cc   :  { %1457 = vadd.xlane.f32.xlu1 %v1456_v25 }
 0x7ce   :  { %v2563_v15 = vpop.eup %2562 }
 0x7cf   :  { %v1459_v18 = vsel %vm287_vm5, %v2563_v15, 0.0  ;;  %v1737_v29 = vpack.c.bf16 %v2563_v15, %v2561_v21 }
 0x7d0   :  { %1460 = vadd.xlane.f32.xlu0 %v1459_v18 }
 0x7d1   :  { %2477 = vmatmul.mubr.msk.bf16.vlgmr.msra.gmra.mrb[16].mxu1 %vm287_vm5, %v1737_v29 }
 0x818   :  { %v1440_v20 = vpop.xlane.xlu1 %1439 }
 0x819   :  { %2564 = vrcp.f32 %v1440_v20 }
 0x81d   :  { %v1443_v48 = vpop.xlane.xlu0 %1442 }
 0x823   :  { %v2565_v43 = vpop.eup %2564 }
 0x84d   :  { %v1446_v34 = vpop.xlane.xlu1 %1445 }
 0x851   :  { %v1449_v36 = vpop.xlane.xlu0 %1448 }
 0x855   :  { %v1452_v22 = vpop.xlane.xlu1 %1451  ;;  %v1455_v38 = vpop.xlane.xlu0 %1454 }
 0x856   :  { %2566 = vrcp.f32 %v1452_v22 }
 0x857   :  { %2568 = vrcp.f32 %v1443_v48 }
 0x858   :  { %2570 = vrcp.f32 %v1455_v38 }
 0x859   :  { %v1458_v40 = vpop.xlane.xlu1 %1457  ;;  %2572 = vrcp.f32 %v1446_v34 }
 0x85a   :  { %2574 = vrcp.f32 %v1458_v40 }
 0x85b   :  { %2576 = vrcp.f32 %v1449_v36 }
 0x85d   :  { %v1461_v14 = vpop.xlane.xlu0 %1460 }
 0x85e   :  { %2578 = vrcp.f32 %v1461_v14 }
 0x860   :  { %v2567_v44 = vpop.eup %2566 }
 0x861   :  { %v2569_v39 = vpop.eup %2568 }
 0x862   :  { %v2571_v54 = vpop.eup %2570 }
 0x863   :  { %v2573_v7 = vpop.eup %2572 }
 0x864   :  { %v2575_v24 = vpop.eup %2574 }
 0x865   :  { %v2577_v27 = vpop.eup %2576 }
 0x868   :  { %v2579_v63 = vpop.eup %2578 }
 0x872   :  { %v1775_v30 = vpop.f32.mrb[12].mxu0 }
 0x873   :  { %v2460_v31 = vpop.f32.mrb[13].mxu0  ;;  %v1922_v47 = vmul.f32 %v2565_v43, %v1775_v30 }
 0x874   :  { %v1778_v52 = vpop.f32.mrb[14].mxu0 }
 0x875   :  { %v2461_v32 = vpop.f32.mrb[15].mxu0  ;;  %v1923_v57 = vmul.f32 %v2569_v39, %v1778_v52 }
 0x898   :  { %v1819_v41 = vpop.f32.mrb[12].mxu1 }
 0x899   :  { %v2466_v42 = vpop.f32.mrb[13].mxu1  ;;  %v1924_v37 = vmul.f32 %v2573_v7, %v1819_v41 }
 0x89a   :  { %v1822_v28 = vpop.f32.mrb[14].mxu1 }
 0x89b   :  { %v2467_v12 = vpop.f32.mrb[15].mxu1  ;;  %v1925_v3 = vmul.f32 %v2577_v27, %v1822_v28 }
 0x89c   :  { %v1863_v46 = vpop.f32.mrb[16].mxu0 }
 0x89d   :  { %v1926_v49 = vmul.f32 %v2567_v44, %v1863_v46  ;;  %v2472_v51 = vpop.f32.mrb[17].mxu0 }
 0x89e   :  { %v1866_v53 = vpop.f32.mrb[18].mxu0 }
 0x89f   :  { %v1930_v55 = vcombine.low %v1922_v47, %v1926_v49  ;;  %v1931_v1 = vcombine.high %v1922_v47, %v1926_v49  ;;  %v1927_v58 = vmul.f32 %v2571_v54, %v1866_v53  ;;  %v2473_v56 = vpop.f32.mrb[19].mxu0 }
 0x8a1   :  { %v1998_v59 = vcombine.low %v1923_v57, %v1927_v58  ;;  %v1999_v60 = vcombine.high %v1923_v57, %v1927_v58  ;;  %v1938_v50 = vrot.slane %v1930_v55, %v2846_v45  ;;  %v1945_v17 = vrot.slane %v1931_v1, %v2846_v45 }
 0x8a3   :  { %v2006_v21 = vrot.slane %v1998_v59, %v2846_v45  ;;  %v2013_v25 = vrot.slane %v1999_v60, %v2846_v45 }
 0x8a4   :  { %v1907_v61 = vpop.f32.mrb[16].mxu1 }
 0x8a5   :  { %v1928_v35 = vmul.f32 %v2575_v24, %v1907_v61  ;;  %v2478_v9 = vpop.f32.mrb[17].mxu1 }
 0x8a6   :  { %v1910_v2 = vpop.f32.mrb[18].mxu1 }
 0x8a7   :  { %v1946_v5 = vcombine.low %v1924_v37, %v1928_v35  ;;  %v1947_v6 = vcombine.high %v1924_v37, %v1928_v35  ;;  %v1929_v11 = vmul.f32 %v2579_v63, %v1910_v2  ;;  %v2479_v8 = vpop.f32.mrb[19].mxu1 }
 0x8a9   :  { %v1954_v10 = vrot.slane %v1946_v5, %v2846_v45  ;;  %v1961_v33 = vrot.slane %v1947_v6, %v2846_v45  ;;  %v2014_v13 = vcombine.low %v1925_v3, %v1929_v11  ;;  %v2015_v23 = vcombine.high %v1925_v3, %v1929_v11 }
 0x8ab   :  { %v1962_v4 = vcombine.low %v1938_v50, %v1954_v10  ;;  %v1963_v16 = vcombine.high %v1938_v50, %v1954_v10  ;;  %v1978_v19 = vcombine.low %v1945_v17, %v1961_v33  ;;  %v1979_v26 = vcombine.high %v1945_v17, %v1961_v33 }
 0x8ac   :  { %v2022_v15 = vrot.slane %v2014_v13, %v2846_v45  ;;  %v2029_v18 = vrot.slane %v2015_v23, %v2846_v45  ;;  %v2511_v13 = vld [vmem:[%s3197_s8 + $0x8] sm:$0xff]  }
 0x8ad   :  { %v1970_v29 = vrot.slane %v1962_v4, %v2856_v62  ;;  %v1977_v30 = vrot.slane %v1963_v16, %v2856_v62  ;;  %v1986_v31 = vrot.slane %v1978_v19, %v2856_v62  ;;  %v1993_v52 = vrot.slane %v1979_v26, %v2856_v62 }
 0x8ae   :  { %v2030_v32 = vcombine.low %v2006_v21, %v2022_v15  ;;  %v2031_v20 = vcombine.high %v2006_v21, %v2022_v15  ;;  %v2046_v48 = vcombine.low %v2013_v25, %v2029_v18  ;;  %v2047_v34 = vcombine.high %v2013_v25, %v2029_v18  ;;  %v2382_v21 = vld [vmem:[%s3195_s6] ss:$0 sm:$0xff] }
 0x8af   :  { %v2066_v36 = vcombine.low %v1970_v29, %v1977_v30  ;;  %v2378_v22 = vcombine.high %v1970_v29, %v1977_v30  ;;  %v2082_v38 = vcombine.low %v1986_v31, %v1993_v52  ;;  %v2379_v40 = vcombine.high %v1986_v31, %v1993_v52 }
 0x8b0   :  { %v2038_v14 = vrot.slane %v2030_v32, %v2856_v62  ;;  %v2045_v41 = vrot.slane %v2031_v20, %v2856_v62  ;;  %v2054_v42 = vrot.slane %v2046_v48, %v2856_v62  ;;  %v2061_v43 = vrot.slane %v2047_v34, %v2856_v62 }
 0x8b1   :  { %v2073_v28 = vrot.slane %v2066_v36, %v2846_v45  ;;  %v2081_v44 = vrot.slane %v2378_v22, %v2846_v45  ;;  %v2089_v12 = vrot.slane %v2082_v38, %v2846_v45  ;;  %v2097_v46 = vrot.slane %v2379_v40, %v2846_v45 }
 0x8b2   :  { %v2134_v39 = vcombine.low %v2038_v14, %v2045_v41  ;;  %v2380_v47 = vcombine.high %v2038_v14, %v2045_v41  ;;  %v2150_v49 = vcombine.low %v2054_v42, %v2061_v43  ;;  %v2381_v51 = vcombine.high %v2054_v42, %v2061_v43 }
 0x8b3   :  { %v2098_v54 = vcombine.low %v2073_v28, %v2081_v44  ;;  %v2114_v53 = vcombine.low %v2089_v12, %v2097_v46  ;;  %v2099_v57 = vcombine.high %v2073_v28, %v2081_v44  ;;  %v2115_v55 = vcombine.high %v2089_v12, %v2097_v46  ;;  %v2386_v46 = vld [vmem:[%s3198_s9] ss:$0 sm:$0xff] }
 0x8b4   :  { %v2141_v1 = vrot.slane %v2134_v39, %v2846_v45  ;;  %v2149_v58 = vrot.slane %v2380_v47, %v2846_v45  ;;  %v2157_v56 = vrot.slane %v2150_v49, %v2846_v45  ;;  %v2165_v59 = vrot.slane %v2381_v51, %v2846_v45 }
 0x8b5   :  { %v2106_v60 = vrot.slane %v2098_v54, %v2856_v62  ;;  %v2122_v7 = vrot.slane %v2114_v53, %v2856_v62  ;;  %v2113_v24 = vrot.slane %v2099_v57, %v2856_v62  ;;  %v2129_v61 = vrot.slane %v2115_v55, %v2856_v62 }
 0x8b6   :  { %v2166_v27 = vcombine.low %v2141_v1, %v2149_v58  ;;  %v2182_v37 = vcombine.low %v2157_v56, %v2165_v59  ;;  %v2167_v35 = vcombine.high %v2141_v1, %v2149_v58  ;;  %v2183_v9 = vcombine.high %v2157_v56, %v2165_v59 }
 0x8b7   :  { %v2131_v63 = vcombine.high %v2106_v60, %v2122_v7  ;;  %v2132_v2 = vcombine.low %v2113_v24, %v2129_v61  ;;  %v2133_v3 = vcombine.high %v2113_v24, %v2129_v61  ;;  %v2130_v5 = vcombine.low %v2106_v60, %v2122_v7 }
 0x8b8   :  { %v2174_v6 = vrot.slane %v2166_v27, %v2856_v62  ;;  %v2190_v45 = vrot.slane %v2182_v37, %v2856_v62  ;;  %v2181_v11 = vrot.slane %v2167_v35, %v2856_v62  ;;  %v2197_v8 = vrot.slane %v2183_v9, %v2856_v62  ;;  %v2510_v62 = vld [vmem:[%s3197_s8] sm:$0xff]   ;;  %s2674_s8 = smov [#allocation7]  }
 0x8b9   :  { %2204 = vrot.lane.b32.xlu1 %v2131_v63, %s2672_s25  ;;  %2481 = vmatpush3.bf16.msra.mxu0 %v2510_v62  ;;  %s2337_s2 = sshll.u32 %s2674_s8, 4  ;;  %s2338_s2 = int_to_ptr.vmem [resolvable:$true] %s2337_s2 }
 0x8ba   :  { %v2199_v50 = vcombine.high %v2174_v6, %v2190_v45  ;;  %v2200_v17 = vcombine.low %v2181_v11, %v2197_v8  ;;  %v2201_v10 = vcombine.high %v2181_v11, %v2197_v8  ;;  %v2198_v33 = vcombine.low %v2174_v6, %v2190_v45  ;;  %2482 = vmatprep.subr.bf16.mxu0 %v2660_v0  ;;  %v2383_v0 = vld [vmem:[%s3196_s7] ss:$0 sm:$0xff]  ;;  %s2628_s19 = scalar_lea.vmem %s2338_s2, 256  ;;  %p2633_p3 = scmp.lt.s32.totalorder %s2338_s2, %s2338_s2 }
 0x8bb   :  { %p2629_p2 = scmp.ne.s32.totalorder %s2338_s2, %s2628_s19  ;;  %p2634_p4 = scmp.lt.s32.totalorder %s2628_s19, %s2628_s19 }
 0x8bc   :  { %2206 = vrot.lane.b32.xlu0 %v2199_v50, %s2672_s25 }
 0x8bd   :  { %2212 = vrot.lane.b32.xlu1 %v2132_v2, %s2671_s24  ;;  %2483 = vmatpush3.bf16.msra.mxu0 %v2511_v13  ;;  %p2635_p5 = por %p2634_p4, %p2633_p3 }
 0x8bf   :  { %p2636_p6 = pnand %p2635_p5, %p2629_p2 }
 0x8c0   :  { %2220 = vrot.lane.b32.xlu0 %v2133_v3, %s2673_s26 }
 0x8c1   :  { %2214 = vrot.lane.b32.xlu1 %v2200_v17, %s2671_s24 }
 0x8c5   :  { %2222 = vrot.lane.b32.xlu1 %v2201_v10, %s2673_s26 }
 0x92b   :  { %v2205_v23 = vpop.permute.xlu1 %2204 }
 0x92c   :  { %v2226_v16 = vsel %vm77_vm2, %v2130_v5, %v2205_v23 }
 0x92e   :  { %v2207_v4 = vpop.permute.xlu0 %2206 }
 0x92f   :  { %v2213_v19 = vpop.permute.xlu1 %2212  ;;  %v2227_v30 = vsel %vm77_vm2, %v2198_v33, %v2207_v4 }
 0x930   :  { %v2228_v26 = vsel %vm287_vm5, %v2226_v16, %v2213_v19 }
 0x932   :  { %v2221_v25 = vpop.permute.xlu0 %2220 }
 0x933   :  { %v2230_v15 = vsel %vm1134_vm6, %v2228_v26, %v2221_v25  ;;  %v2215_v18 = vpop.permute.xlu1 %2214 }
 0x934   :  { %v2239_v29 = vmul.f32 %v2382_v21, %v2230_v15  ;;  %v2229_v52 = vsel %vm287_vm5, %v2227_v30, %v2215_v18 }
 0x936   :  { %v2248_v31 = vadd.f32 %v2383_v0, %v2239_v29 }
 0x937   :  { %v2223_v32 = vpop.permute.xlu1 %2222 }
 0x938   :  { %v2252_v20 = vmin.f32 %v2248_v31, 0.0  ;;  %v2231_v48 = vsel %vm1134_vm6, %v2229_v52, %v2223_v32  ;;  %vm2250_vm10 = vcmp.gt.f32.partialorder %v2248_v31, 0.0 }
 0x939   :  { %v2240_v34 = vmul.f32 %v2382_v21, %v2231_v48 }
 0x93a   :  { %v2254_v36 = vmul.f32 1.442695, %v2252_v20 }
 0x93b   :  { %v2249_v22 = vadd.f32 %v2383_v0, %v2240_v34 }
 0x93c   :  { %2580 = vpow2.f32 %v2254_v36 }
 0x93d   :  { %v2253_v38 = vmin.f32 %v2249_v22, 0.0  ;;  %vm2251_vm11 = vcmp.gt.f32.partialorder %v2249_v22, 0.0 }
 0x93f   :  { %v2256_v40 = vmul.f32 1.442695, %v2253_v38 }
 0x941   :  { %2582 = vpow2.f32 %v2256_v40 }
 0x946   :  { %v2581_v14 = vpop.eup %2580 }
 0x947   :  { %v2384_v41 = vadd.f32 -1.0, %v2581_v14 }
 0x949   :  { %v2260_v28 = vsel %vm2250_vm10, %v2248_v31, %v2384_v41 }
 0x94b   :  { %v2583_v42 = vpop.eup %2582 }
 0x94c   :  { %v2385_v43 = vadd.f32 -1.0, %v2583_v42 }
 0x94e   :  { %v2261_v44 = vsel %vm2251_vm11, %v2249_v22, %v2385_v43 }
 0x94f   :  { %v2262_v12 = vpack.c.bf16 %v2261_v44, %v2260_v28 }
 0x951   :  { %2485 = vmatmul.mubr.msk.bf16.vlgmr.msra.gmra.mrb[20].mxu0 %vm1184_vm9, %v2262_v12 }
 0xa24   :  { %v2323_v39 = vpop.f32.mrb[20].mxu0 }
 0xa25   :  { %v2324_v47 = vadd.f32 %v2386_v46, %v2323_v39  ;;  %v2486_v49 = vpop.f32.mrb[21].mxu0 }
 0xa26   :  { %v2326_v51 = vpop.f32.mrb[22].mxu0 }
 0xa27   :  { %2330 = vst [vmem:[#allocation7] sm:$0xff] %v2324_v47  ;;  %v2327_v54 = vadd.f32 %v2386_v46, %v2326_v51  ;;  %v2487_v53 = vpop.f32.mrb[23].mxu0 }
 0xa29   :  { %2331 = vst [vmem:[#allocation7 + $0x8] sm:$0xff] %v2327_v54 }
 0xa2a   :  { %2639 = shalt.err (!%p2636_p6)
}
 0xa2b   :  { %s2640_s21 = scalar_lea.hbm %s3199_s10, 256 }
 0xa2c   :  { %p2641_p7 = scmp.ne.s32.totalorder %s3199_s10, %s2640_s21  ;;  %p2644_p8 = scmp.lt.u32.totalorder %s2640_s21, %s3199_s10 }
 0xa2e   :  { %p2646_p9 = pnand %p2644_p8, %p2641_p7 }
 0xa30   :  { %2649 = shalt.err (!%p2646_p9)
}
 0xa31   :  { %s2675_s26 = smov 128  }
 0xa32   :  { %2343 = dma.vmem_to_hbm [thread:$0]  %s2338_s2, 256, %s3199_s10, [#allocation4], %s2675_s26, %s2675_s26, %s2672_s25  }
 0xa33   :  { %2654 = dma.done.wait [#allocation4], 256  }
 0xa34   :  { %2655 = vsyncadd [#allocation4], 4294967040 }
 0xa35   :  { %2347 = vsyncpa [#allocation3], 1 }
 0xa36   :  { %2348 = vsyncpa [#allocation6], 1 }
 0xa37   :  { %2349 = vsyncpa [#allocation4], 1 }

</bundles_post_ra>
